<compile_context>
chip_gen: v7x
topology: tpu7x:2x2x1
jax: 0.10.0
libtpu: 0.0.40
codegen_flags: <defaults>
</compile_context>

<pallas_src>
import jax
import jax.numpy as jnp
import numpy as np
from jax.experimental import pallas as pl
from jax.experimental.pallas import tpu as pltpu

# ---- model / problem sizes (small, consistent with the module) -------------
VOCAB = 50       # vocab_size
EMB = 32         # embedding_dim
HID = 32         # hidden_dim
OUT = 8          # output_dim
BATCH = 2
SEQ = 8


# ---------------------------------------------------------------------------
# Kernel: embedding gather + interleaved bidirectional GRU + fused FC
# ---------------------------------------------------------------------------
def gru_ate_kernel(tok_ref, emb_ref,
                   wih_f_ref, whh_f_ref, b_f_ref,
                   wih_b_ref, whh_b_ref, b_b_ref,
                   wfc_ref, bfc_ref,
                   y_ref,
                   x_scr):
    T, B, H = SEQ, BATCH, HID

    # ---- fused embedding gather: x[t*B + b, :] = table[tokens[b, t]] -------
    # emb_ref is (VOCAB, 1, EMB): the gather index lands on the untiled
    # leading axis (dynamic leading-dim reads are cheap and always supported).
    for t in range(T):
        for b in range(B):
            tok = tok_ref[b, t]                       # SMEM scalar read
            row = t * B + b
            x_scr[row:row + 1, :] = emb_ref[tok]      # (1, E) dynamic row read
    x = x_scr[...]                                     # (T*B, E)

    # ---- input-side gates for all timesteps, one packed dot per direction --
    # column layout of gi_*: [r | z | n], each H wide; r/z biases pre-folded.
    gi_f = jnp.dot(x, wih_f_ref[...], preferred_element_type=jnp.float32) + b_f_ref[0:1, :]
    gi_b = jnp.dot(x, wih_b_ref[...], preferred_element_type=jnp.float32) + b_b_ref[0:1, :]

    whh_f = whh_f_ref[...]                             # (H, 3H) packed [r|z|n]
    whh_b = whh_b_ref[...]
    b_hn_f = b_f_ref[1:2, 2 * H:3 * H]                 # (1, H): bhh_n (scaled by r)
    b_hn_b = b_b_ref[1:2, 2 * H:3 * H]

    def gru_step(h, gi_t, whh, b_hn):
        gh = jnp.dot(h, whh, preferred_element_type=jnp.float32)   # ONE MXU push
        r = jax.nn.sigmoid(gi_t[:, 0:H] + gh[:, 0:H])
        z = jax.nn.sigmoid(gi_t[:, H:2 * H] + gh[:, H:2 * H])
        n = jnp.tanh(gi_t[:, 2 * H:3 * H] + r * (gh[:, 2 * H:3 * H] + b_hn))
        return (1.0 - z) * n + z * h

    hf = jnp.zeros((B, H), jnp.float32)
    hb = jnp.zeros((B, H), jnp.float32)
    hf_t = [None] * T
    hb_t = [None] * T
    for i in range(T):                 # fully unrolled; fwd & bwd interleaved
        tf, tb = i, T - 1 - i
        hf = gru_step(hf, gi_f[tf * B:(tf + 1) * B, :], whh_f, b_hn_f)
        hb = gru_step(hb, gi_b[tb * B:(tb + 1) * B, :], whh_b, b_hn_b)
        hf_t[tf] = hf                  # hidden states stay in registers
        hb_t[tb] = hb

    # ---- fused FC: y_t = hf_t @ Wfc[:H] + hb_t @ Wfc[H:] + b ---------------
    wfc_f = wfc_ref[0:H, :]
    wfc_b = wfc_ref[H:2 * H, :]
    bfc = bfc_ref[...]
    for t in range(T):
        lo = t * B
        y_ref[lo:lo + B, :] = (
            jnp.dot(hf_t[t], wfc_f, preferred_element_type=jnp.float32)
            + jnp.dot(hb_t[t], wfc_b, preferred_element_type=jnp.float32)
            + bfc)


# ---------------------------------------------------------------------------
# One-time parameter repack (runs OUTSIDE the jitted forward)
# ---------------------------------------------------------------------------
def _pack_bias(bih, bhh, H):
    b_gi = jnp.concatenate([bih[:, :H] + bhh[:, :H],          # folded r bias
                            bih[:, H:2 * H] + bhh[:, H:2 * H],  # folded z bias
                            bih[:, 2 * H:]], axis=1)            # b_in
    b_hn = jnp.concatenate([jnp.zeros((1, 2 * H), jnp.float32),
                            bhh[:, 2 * H:]], axis=1)            # b_hn (scaled by r)
    return jnp.concatenate([b_gi, b_hn], axis=0)                # (2, 3H)


def prepare_params(p):
    H = HID
    return {
        "emb": p["embedding"].astype(jnp.float32).reshape(VOCAB, 1, EMB),
        "wih_f": p["wih_f"].astype(jnp.float32),
        "whh_f": p["whh_f"].astype(jnp.float32),
        "b_f": _pack_bias(p["bih_f"], p["bhh_f"], H),
        "wih_b": p["wih_b"].astype(jnp.float32),
        "whh_b": p["whh_b"].astype(jnp.float32),
        "b_b": _pack_bias(p["bih_b"], p["bhh_b"], H),
        "w_fc": p["w_fc"].astype(jnp.float32),
        "b_fc": p["b_fc"].astype(jnp.float32),
    }


# ---------------------------------------------------------------------------
# Wrapper
# ---------------------------------------------------------------------------
@jax.jit
def gru_ate_forward(tokens, packed):
    T, B = SEQ, BATCH
    smem_spec = pl.BlockSpec(memory_space=pltpu.MemorySpace.SMEM)
    vmem_spec = lambda: pl.BlockSpec(memory_space=pltpu.MemorySpace.VMEM)

    y_flat = pl.pallas_call(
        gru_ate_kernel,
        out_shape=jax.ShapeDtypeStruct((T * B, OUT), jnp.float32),
        in_specs=[smem_spec] + [vmem_spec() for _ in range(9)],
        out_specs=vmem_spec(),
        scratch_shapes=[pltpu.VMEM((T * B, EMB), jnp.float32)],   # x assembly
    )(tokens,
      packed["emb"],
      packed["wih_f"], packed["whh_f"], packed["b_f"],
      packed["wih_b"], packed["whh_b"], packed["b_b"],
      packed["w_fc"], packed["b_fc"])

    return y_flat.reshape(T, B, OUT).transpose(1, 0, 2)           # (B, T, O)


# ---------------------------------------------------------------------------
# Pure-JAX reference (for correctness check)
# ---------------------------------------------------------------------------
def _gru_ref_dir(x_tm, wih, whh, bih, bhh, reverse):
    def step(h, x_t):
        gi = x_t @ wih + bih
        gh = h @ whh + bhh
        r = jax.nn.sigmoid(gi[:, :HID] + gh[:, :HID])
        z = jax.nn.sigmoid(gi[:, HID:2 * HID] + gh[:, HID:2 * HID])
        n = jnp.tanh(gi[:, 2 * HID:] + r * gh[:, 2 * HID:])
        h_new = (1.0 - z) * n + z * h
        return h_new, h_new
    h0 = jnp.zeros((x_tm.shape[1], HID), jnp.float32)
    _, hs = jax.lax.scan(step, h0, x_tm, reverse=reverse)
    return hs


def ref_forward(tokens, p):
    emb = jnp.take(p["embedding"], tokens, axis=0)
    x_tm = jnp.transpose(emb, (1, 0, 2)).astype(jnp.float32)
    hf = _gru_ref_dir(x_tm, p["wih_f"], p["whh_f"], p["bih_f"], p["bhh_f"], False)
    hb = _gru_ref_dir(x_tm, p["wih_b"], p["whh_b"], p["bih_b"], p["bhh_b"], True)
    h = jnp.concatenate([hf, hb], axis=-1)
    y = h @ p["w_fc"] + p["b_fc"]
    return jnp.transpose(y, (1, 0, 2))


# ---------------------------------------------------------------------------
def init_params(key):
    ks = jax.random.split(key, 12)
    s = 0.1
    return {
        "embedding": jax.random.normal(ks[0], (VOCAB, EMB), jnp.float32),
        # weights stored transposed relative to PyTorch: (in, 3H), gate order [r, z, n]
        "wih_f": s * jax.random.normal(ks[1], (EMB, 3 * HID), jnp.float32),
        "whh_f": s * jax.random.normal(ks[2], (HID, 3 * HID), jnp.float32),
        "bih_f": s * jax.random.normal(ks[3], (1, 3 * HID), jnp.float32),
        "bhh_f": s * jax.random.normal(ks[4], (1, 3 * HID), jnp.float32),
        "wih_b": s * jax.random.normal(ks[5], (EMB, 3 * HID), jnp.float32),
        "whh_b": s * jax.random.normal(ks[6], (HID, 3 * HID), jnp.float32),
        "bih_b": s * jax.random.normal(ks[7], (1, 3 * HID), jnp.float32),
        "bhh_b": s * jax.random.normal(ks[8], (1, 3 * HID), jnp.float32),
        "w_fc": s * jax.random.normal(ks[9], (2 * HID, OUT), jnp.float32),
        "b_fc": s * jax.random.normal(ks[10], (1, OUT), jnp.float32),
    }


if __name__ == "__main__":
    key = jax.random.PRNGKey(0)
    pkey, tkey = jax.random.split(key)
    params = init_params(pkey)
    tokens = jax.random.randint(tkey, (BATCH, SEQ), 0, VOCAB, dtype=jnp.int32)

    packed = jax.tree_util.tree_map(jax.block_until_ready, prepare_params(params))

    y = jax.block_until_ready(gru_ate_forward(tokens, packed))
    assert y.shape == (BATCH, SEQ, OUT), y.shape

    y_ref = jax.block_until_ready(ref_forward(tokens, params))
    np.testing.assert_allclose(np.asarray(y), np.asarray(y_ref),
                               rtol=1e-3, atol=1e-3)
    print("KERNEL_OK")
</pallas_src>

<mosaic_0001>
module attributes {stable_mosaic.version = 11 : i64} {
  func.func @gru_ate_kernel(%arg0: memref<2x8xi32, #tpu.memory_space<smem>>, %arg1: memref<50x1x32xf32, #tpu.memory_space<vmem>>, %arg2: memref<32x96xf32, #tpu.memory_space<vmem>>, %arg3: memref<32x96xf32, #tpu.memory_space<vmem>>, %arg4: memref<2x96xf32, #tpu.memory_space<vmem>>, %arg5: memref<32x96xf32, #tpu.memory_space<vmem>>, %arg6: memref<32x96xf32, #tpu.memory_space<vmem>>, %arg7: memref<2x96xf32, #tpu.memory_space<vmem>>, %arg8: memref<64x8xf32, #tpu.memory_space<vmem>>, %arg9: memref<1x8xf32, #tpu.memory_space<vmem>>, %arg10: memref<16x8xf32, #tpu.memory_space<vmem>>, %arg11: memref<16x32xf32, #tpu.memory_space<vmem>>) attributes {dimension_semantics = [], scalar_prefetch = 0 : i64, scratch_operands = 1 : i64, tpu.core_type = #tpu.core_type<tc>} {
    %c0 = arith.constant 0 : index
    %c0_0 = arith.constant 0 : index
    %0 = memref.load %arg0[%c0, %c0_0] : memref<2x8xi32, #tpu.memory_space<smem>>
    %1 = arith.index_cast %0 : i32 to index
    %c0_1 = arith.constant 0 : index
    %c0_2 = arith.constant 0 : index
    %2 = vector.load %arg1[%1, %c0_1, %c0_2] : memref<50x1x32xf32, #tpu.memory_space<vmem>>, vector<1x1x32xf32>
    %3 = vector.shape_cast %2 : vector<1x1x32xf32> to vector<1x32xf32>
    %c0_3 = arith.constant 0 : index
    %c0_4 = arith.constant 0 : index
    %4 = vector.load %arg11[%c0_3, %c0_4] : memref<16x32xf32, #tpu.memory_space<vmem>>, vector<1x32xf32>
    tpu.vector_store %arg11[%c0_3, %c0_4], %3 {strides = array<i32>} : memref<16x32xf32, #tpu.memory_space<vmem>>, vector<1x32xf32>,
    %c1 = arith.constant 1 : index
    %c0_5 = arith.constant 0 : index
    %5 = memref.load %arg0[%c1, %c0_5] : memref<2x8xi32, #tpu.memory_space<smem>>
    %6 = arith.index_cast %5 : i32 to index
    %c0_6 = arith.constant 0 : index
    %c0_7 = arith.constant 0 : index
    %7 = vector.load %arg1[%6, %c0_6, %c0_7] : memref<50x1x32xf32, #tpu.memory_space<vmem>>, vector<1x1x32xf32>
    %8 = vector.shape_cast %7 : vector<1x1x32xf32> to vector<1x32xf32>
    %c1_8 = arith.constant 1 : index
    %c0_9 = arith.constant 0 : index
    %9 = vector.load %arg11[%c1_8, %c0_9] : memref<16x32xf32, #tpu.memory_space<vmem>>, vector<1x32xf32>
    tpu.vector_store %arg11[%c1_8, %c0_9], %8 {strides = array<i32>} : memref<16x32xf32, #tpu.memory_space<vmem>>, vector<1x32xf32>,
    %c0_10 = arith.constant 0 : index
    %c1_11 = arith.constant 1 : index
    %10 = memref.load %arg0[%c0_10, %c1_11] : memref<2x8xi32, #tpu.memory_space<smem>>
    %11 = arith.index_cast %10 : i32 to index
    %c0_12 = arith.constant 0 : index
    %c0_13 = arith.constant 0 : index
    %12 = vector.load %arg1[%11, %c0_12, %c0_13] : memref<50x1x32xf32, #tpu.memory_space<vmem>>, vector<1x1x32xf32>
    %13 = vector.shape_cast %12 : vector<1x1x32xf32> to vector<1x32xf32>
    %c2 = arith.constant 2 : index
    %c0_14 = arith.constant 0 : index
    %14 = vector.load %arg11[%c2, %c0_14] : memref<16x32xf32, #tpu.memory_space<vmem>>, vector<1x32xf32>
    tpu.vector_store %arg11[%c2, %c0_14], %13 {strides = array<i32>} : memref<16x32xf32, #tpu.memory_space<vmem>>, vector<1x32xf32>,
    %c1_15 = arith.constant 1 : index
    %c1_16 = arith.constant 1 : index
    %15 = memref.load %arg0[%c1_15, %c1_16] : memref<2x8xi32, #tpu.memory_space<smem>>
    %16 = arith.index_cast %15 : i32 to index
    %c0_17 = arith.constant 0 : index
    %c0_18 = arith.constant 0 : index
    %17 = vector.load %arg1[%16, %c0_17, %c0_18] : memref<50x1x32xf32, #tpu.memory_space<vmem>>, vector<1x1x32xf32>
    %18 = vector.shape_cast %17 : vector<1x1x32xf32> to vector<1x32xf32>
    %c3 = arith.constant 3 : index
    %c0_19 = arith.constant 0 : index
    %19 = vector.load %arg11[%c3, %c0_19] : memref<16x32xf32, #tpu.memory_space<vmem>>, vector<1x32xf32>
    tpu.vector_store %arg11[%c3, %c0_19], %18 {strides = array<i32>} : memref<16x32xf32, #tpu.memory_space<vmem>>, vector<1x32xf32>,
    %c0_20 = arith.constant 0 : index
    %c2_21 = arith.constant 2 : index
    %20 = memref.load %arg0[%c0_20, %c2_21] : memref<2x8xi32, #tpu.memory_space<smem>>
    %21 = arith.index_cast %20 : i32 to index
    %c0_22 = arith.constant 0 : index
    %c0_23 = arith.constant 0 : index
    %22 = vector.load %arg1[%21, %c0_22, %c0_23] : memref<50x1x32xf32, #tpu.memory_space<vmem>>, vector<1x1x32xf32>
    %23 = vector.shape_cast %22 : vector<1x1x32xf32> to vector<1x32xf32>
    %c4 = arith.constant 4 : index
    %c0_24 = arith.constant 0 : index
    %24 = vector.load %arg11[%c4, %c0_24] : memref<16x32xf32, #tpu.memory_space<vmem>>, vector<1x32xf32>
    tpu.vector_store %arg11[%c4, %c0_24], %23 {strides = array<i32>} : memref<16x32xf32, #tpu.memory_space<vmem>>, vector<1x32xf32>,
    %c1_25 = arith.constant 1 : index
    %c2_26 = arith.constant 2 : index
    %25 = memref.load %arg0[%c1_25, %c2_26] : memref<2x8xi32, #tpu.memory_space<smem>>
    %26 = arith.index_cast %25 : i32 to index
    %c0_27 = arith.constant 0 : index
    %c0_28 = arith.constant 0 : index
    %27 = vector.load %arg1[%26, %c0_27, %c0_28] : memref<50x1x32xf32, #tpu.memory_space<vmem>>, vector<1x1x32xf32>
    %28 = vector.shape_cast %27 : vector<1x1x32xf32> to vector<1x32xf32>
    %c5 = arith.constant 5 : index
    %c0_29 = arith.constant 0 : index
    %29 = vector.load %arg11[%c5, %c0_29] : memref<16x32xf32, #tpu.memory_space<vmem>>, vector<1x32xf32>
    tpu.vector_store %arg11[%c5, %c0_29], %28 {strides = array<i32>} : memref<16x32xf32, #tpu.memory_space<vmem>>, vector<1x32xf32>,
    %c0_30 = arith.constant 0 : index
    %c3_31 = arith.constant 3 : index
    %30 = memref.load %arg0[%c0_30, %c3_31] : memref<2x8xi32, #tpu.memory_space<smem>>
    %31 = arith.index_cast %30 : i32 to index
    %c0_32 = arith.constant 0 : index
    %c0_33 = arith.constant 0 : index
    %32 = vector.load %arg1[%31, %c0_32, %c0_33] : memref<50x1x32xf32, #tpu.memory_space<vmem>>, vector<1x1x32xf32>
    %33 = vector.shape_cast %32 : vector<1x1x32xf32> to vector<1x32xf32>
    %c6 = arith.constant 6 : index
    %c0_34 = arith.constant 0 : index
    %34 = vector.load %arg11[%c6, %c0_34] : memref<16x32xf32, #tpu.memory_space<vmem>>, vector<1x32xf32>
    tpu.vector_store %arg11[%c6, %c0_34], %33 {strides = array<i32>} : memref<16x32xf32, #tpu.memory_space<vmem>>, vector<1x32xf32>,
    %c1_35 = arith.constant 1 : index
    %c3_36 = arith.constant 3 : index
    %35 = memref.load %arg0[%c1_35, %c3_36] : memref<2x8xi32, #tpu.memory_space<smem>>
    %36 = arith.index_cast %35 : i32 to index
    %c0_37 = arith.constant 0 : index
    %c0_38 = arith.constant 0 : index
    %37 = vector.load %arg1[%36, %c0_37, %c0_38] : memref<50x1x32xf32, #tpu.memory_space<vmem>>, vector<1x1x32xf32>
    %38 = vector.shape_cast %37 : vector<1x1x32xf32> to vector<1x32xf32>
    %c7 = arith.constant 7 : index
    %c0_39 = arith.constant 0 : index
    %39 = vector.load %arg11[%c7, %c0_39] : memref<16x32xf32, #tpu.memory_space<vmem>>, vector<1x32xf32>
    tpu.vector_store %arg11[%c7, %c0_39], %38 {strides = array<i32>} : memref<16x32xf32, #tpu.memory_space<vmem>>, vector<1x32xf32>,
    %c0_40 = arith.constant 0 : index
    %c4_41 = arith.constant 4 : index
    %40 = memref.load %arg0[%c0_40, %c4_41] : memref<2x8xi32, #tpu.memory_space<smem>>
    %41 = arith.index_cast %40 : i32 to index
    %c0_42 = arith.constant 0 : index
    %c0_43 = arith.constant 0 : index
    %42 = vector.load %arg1[%41, %c0_42, %c0_43] : memref<50x1x32xf32, #tpu.memory_space<vmem>>, vector<1x1x32xf32>
    %43 = vector.shape_cast %42 : vector<1x1x32xf32> to vector<1x32xf32>
    %c8 = arith.constant 8 : index
    %c0_44 = arith.constant 0 : index
    %44 = vector.load %arg11[%c8, %c0_44] : memref<16x32xf32, #tpu.memory_space<vmem>>, vector<1x32xf32>
    tpu.vector_store %arg11[%c8, %c0_44], %43 {strides = array<i32>} : memref<16x32xf32, #tpu.memory_space<vmem>>, vector<1x32xf32>,
    %c1_45 = arith.constant 1 : index
    %c4_46 = arith.constant 4 : index
    %45 = memref.load %arg0[%c1_45, %c4_46] : memref<2x8xi32, #tpu.memory_space<smem>>
    %46 = arith.index_cast %45 : i32 to index
    %c0_47 = arith.constant 0 : index
    %c0_48 = arith.constant 0 : index
    %47 = vector.load %arg1[%46, %c0_47, %c0_48] : memref<50x1x32xf32, #tpu.memory_space<vmem>>, vector<1x1x32xf32>
    %48 = vector.shape_cast %47 : vector<1x1x32xf32> to vector<1x32xf32>
    %c9 = arith.constant 9 : index
    %c0_49 = arith.constant 0 : index
    %49 = vector.load %arg11[%c9, %c0_49] : memref<16x32xf32, #tpu.memory_space<vmem>>, vector<1x32xf32>
    tpu.vector_store %arg11[%c9, %c0_49], %48 {strides = array<i32>} : memref<16x32xf32, #tpu.memory_space<vmem>>, vector<1x32xf32>,
    %c0_50 = arith.constant 0 : index
    %c5_51 = arith.constant 5 : index
    %50 = memref.load %arg0[%c0_50, %c5_51] : memref<2x8xi32, #tpu.memory_space<smem>>
    %51 = arith.index_cast %50 : i32 to index
    %c0_52 = arith.constant 0 : index
    %c0_53 = arith.constant 0 : index
    %52 = vector.load %arg1[%51, %c0_52, %c0_53] : memref<50x1x32xf32, #tpu.memory_space<vmem>>, vector<1x1x32xf32>
    %53 = vector.shape_cast %52 : vector<1x1x32xf32> to vector<1x32xf32>
    %c10 = arith.constant 10 : index
    %c0_54 = arith.constant 0 : index
    %54 = vector.load %arg11[%c10, %c0_54] : memref<16x32xf32, #tpu.memory_space<vmem>>, vector<1x32xf32>
    tpu.vector_store %arg11[%c10, %c0_54], %53 {strides = array<i32>} : memref<16x32xf32, #tpu.memory_space<vmem>>, vector<1x32xf32>,
    %c1_55 = arith.constant 1 : index
    %c5_56 = arith.constant 5 : index
    %55 = memref.load %arg0[%c1_55, %c5_56] : memref<2x8xi32, #tpu.memory_space<smem>>
    %56 = arith.index_cast %55 : i32 to index
    %c0_57 = arith.constant 0 : index
    %c0_58 = arith.constant 0 : index
    %57 = vector.load %arg1[%56, %c0_57, %c0_58] : memref<50x1x32xf32, #tpu.memory_space<vmem>>, vector<1x1x32xf32>
    %58 = vector.shape_cast %57 : vector<1x1x32xf32> to vector<1x32xf32>
    %c11 = arith.constant 11 : index
    %c0_59 = arith.constant 0 : index
    %59 = vector.load %arg11[%c11, %c0_59] : memref<16x32xf32, #tpu.memory_space<vmem>>, vector<1x32xf32>
    tpu.vector_store %arg11[%c11, %c0_59], %58 {strides = array<i32>} : memref<16x32xf32, #tpu.memory_space<vmem>>, vector<1x32xf32>,
    %c0_60 = arith.constant 0 : index
    %c6_61 = arith.constant 6 : index
    %60 = memref.load %arg0[%c0_60, %c6_61] : memref<2x8xi32, #tpu.memory_space<smem>>
    %61 = arith.index_cast %60 : i32 to index
    %c0_62 = arith.constant 0 : index
    %c0_63 = arith.constant 0 : index
    %62 = vector.load %arg1[%61, %c0_62, %c0_63] : memref<50x1x32xf32, #tpu.memory_space<vmem>>, vector<1x1x32xf32>
    %63 = vector.shape_cast %62 : vector<1x1x32xf32> to vector<1x32xf32>
    %c12 = arith.constant 12 : index
    %c0_64 = arith.constant 0 : index
    %64 = vector.load %arg11[%c12, %c0_64] : memref<16x32xf32, #tpu.memory_space<vmem>>, vector<1x32xf32>
    tpu.vector_store %arg11[%c12, %c0_64], %63 {strides = array<i32>} : memref<16x32xf32, #tpu.memory_space<vmem>>, vector<1x32xf32>,
    %c1_65 = arith.constant 1 : index
    %c6_66 = arith.constant 6 : index
    %65 = memref.load %arg0[%c1_65, %c6_66] : memref<2x8xi32, #tpu.memory_space<smem>>
    %66 = arith.index_cast %65 : i32 to index
    %c0_67 = arith.constant 0 : index
    %c0_68 = arith.constant 0 : index
    %67 = vector.load %arg1[%66, %c0_67, %c0_68] : memref<50x1x32xf32, #tpu.memory_space<vmem>>, vector<1x1x32xf32>
    %68 = vector.shape_cast %67 : vector<1x1x32xf32> to vector<1x32xf32>
    %c13 = arith.constant 13 : index
    %c0_69 = arith.constant 0 : index
    %69 = vector.load %arg11[%c13, %c0_69] : memref<16x32xf32, #tpu.memory_space<vmem>>, vector<1x32xf32>
    tpu.vector_store %arg11[%c13, %c0_69], %68 {strides = array<i32>} : memref<16x32xf32, #tpu.memory_space<vmem>>, vector<1x32xf32>,
    %c0_70 = arith.constant 0 : index
    %c7_71 = arith.constant 7 : index
    %70 = memref.load %arg0[%c0_70, %c7_71] : memref<2x8xi32, #tpu.memory_space<smem>>
    %71 = arith.index_cast %70 : i32 to index
    %c0_72 = arith.constant 0 : index
    %c0_73 = arith.constant 0 : index
    %72 = vector.load %arg1[%71, %c0_72, %c0_73] : memref<50x1x32xf32, #tpu.memory_space<vmem>>, vector<1x1x32xf32>
    %73 = vector.shape_cast %72 : vector<1x1x32xf32> to vector<1x32xf32>
    %c14 = arith.constant 14 : index
    %c0_74 = arith.constant 0 : index
    %74 = vector.load %arg11[%c14, %c0_74] : memref<16x32xf32, #tpu.memory_space<vmem>>, vector<1x32xf32>
    tpu.vector_store %arg11[%c14, %c0_74], %73 {strides = array<i32>} : memref<16x32xf32, #tpu.memory_space<vmem>>, vector<1x32xf32>,
    %c1_75 = arith.constant 1 : index
    %c7_76 = arith.constant 7 : index
    %75 = memref.load %arg0[%c1_75, %c7_76] : memref<2x8xi32, #tpu.memory_space<smem>>
    %76 = arith.index_cast %75 : i32 to index
    %c0_77 = arith.constant 0 : index
    %c0_78 = arith.constant 0 : index
    %77 = vector.load %arg1[%76, %c0_77, %c0_78] : memref<50x1x32xf32, #tpu.memory_space<vmem>>, vector<1x1x32xf32>
    %78 = vector.shape_cast %77 : vector<1x1x32xf32> to vector<1x32xf32>
    %c15 = arith.constant 15 : index
    %c0_79 = arith.constant 0 : index
    %79 = vector.load %arg11[%c15, %c0_79] : memref<16x32xf32, #tpu.memory_space<vmem>>, vector<1x32xf32>
    tpu.vector_store %arg11[%c15, %c0_79], %78 {strides = array<i32>} : memref<16x32xf32, #tpu.memory_space<vmem>>, vector<1x32xf32>,
    %c0_80 = arith.constant 0 : index
    %c0_81 = arith.constant 0 : index
    %80 = vector.load %arg11[%c0_80, %c0_81] : memref<16x32xf32, #tpu.memory_space<vmem>>, vector<16x32xf32>
    %c0_82 = arith.constant 0 : index
    %c0_83 = arith.constant 0 : index
    %81 = vector.load %arg2[%c0_82, %c0_83] : memref<32x96xf32, #tpu.memory_space<vmem>>, vector<32x96xf32>
    %cst = arith.constant dense<0.000000e+00> : vector<16x96xf32>
    %82 = tpu.matmul %80, %81, %cst {dimension_numbers = #tpu.dot_dimension_numbers<[1], [0], [0], [1], [0, 0, 1, 1], [], []>} : vector<16x32xf32>, vector<32x96xf32>, vector<16x96xf32> -> vector<16x96xf32>
    %c0_84 = arith.constant 0 : index
    %c0_85 = arith.constant 0 : index
    %83 = vector.load %arg4[%c0_84, %c0_85] : memref<2x96xf32, #tpu.memory_space<vmem>>, vector<1x96xf32>
    %84 = vector.broadcast %83 : vector<1x96xf32> to vector<16x96xf32>
    %85 = arith.addf %82, %84 : vector<16x96xf32>
    %c0_86 = arith.constant 0 : index
    %c0_87 = arith.constant 0 : index
    %86 = vector.load %arg5[%c0_86, %c0_87] : memref<32x96xf32, #tpu.memory_space<vmem>>, vector<32x96xf32>
    %cst_88 = arith.constant dense<0.000000e+00> : vector<16x96xf32>
    %87 = tpu.matmul %80, %86, %cst_88 {dimension_numbers = #tpu.dot_dimension_numbers<[1], [0], [0], [1], [0, 0, 1, 1], [], []>} : vector<16x32xf32>, vector<32x96xf32>, vector<16x96xf32> -> vector<16x96xf32>
    %c0_89 = arith.constant 0 : index
    %c0_90 = arith.constant 0 : index
    %88 = vector.load %arg7[%c0_89, %c0_90] : memref<2x96xf32, #tpu.memory_space<vmem>>, vector<1x96xf32>
    %89 = vector.broadcast %88 : vector<1x96xf32> to vector<16x96xf32>
    %90 = arith.addf %87, %89 : vector<16x96xf32>
    %c0_91 = arith.constant 0 : index
    %c0_92 = arith.constant 0 : index
    %91 = vector.load %arg3[%c0_91, %c0_92] : memref<32x96xf32, #tpu.memory_space<vmem>>, vector<32x96xf32>
    %c0_93 = arith.constant 0 : index
    %c0_94 = arith.constant 0 : index
    %92 = vector.load %arg6[%c0_93, %c0_94] : memref<32x96xf32, #tpu.memory_space<vmem>>, vector<32x96xf32>
    %c1_95 = arith.constant 1 : index
    %c64 = arith.constant 64 : index
    %93 = vector.load %arg4[%c1_95, %c64] : memref<2x96xf32, #tpu.memory_space<vmem>>, vector<1x32xf32>
    %c1_96 = arith.constant 1 : index
    %c64_97 = arith.constant 64 : index
    %94 = vector.load %arg7[%c1_96, %c64_97] : memref<2x96xf32, #tpu.memory_space<vmem>>, vector<1x32xf32>
    %cst_98 = arith.constant 0.000000e+00 : f32
    %95 = vector.broadcast %cst_98 : f32 to vector<2x32xf32>
    %cst_99 = arith.constant 0.000000e+00 : f32
    %96 = vector.broadcast %cst_99 : f32 to vector<2x32xf32>
    %97 = vector.extract_strided_slice %85 {offsets = [0, 0], sizes = [2, 96], strides = [1, 1]} : vector<16x96xf32> to vector<2x96xf32>
    %cst_100 = arith.constant dense<0.000000e+00> : vector<2x96xf32>
    %98 = tpu.matmul %95, %91, %cst_100 {dimension_numbers = #tpu.dot_dimension_numbers<[1], [0], [0], [1], [0, 0, 1, 1], [], []>} : vector<2x32xf32>, vector<32x96xf32>, vector<2x96xf32> -> vector<2x96xf32>
    %99 = vector.extract_strided_slice %97 {offsets = [0, 0], sizes = [2, 32], strides = [1, 1]} : vector<2x96xf32> to vector<2x32xf32>
    %100 = vector.extract_strided_slice %98 {offsets = [0, 0], sizes = [2, 32], strides = [1, 1]} : vector<2x96xf32> to vector<2x32xf32>
    %101 = arith.addf %99, %100 : vector<2x32xf32>
    %102 = arith.negf %101 : vector<2x32xf32>
    %103 = math.exp %102 : vector<2x32xf32>
    %cst_101 = arith.constant 1.000000e+00 : f32
    %104 = vector.broadcast %cst_101 : f32 to vector<2x32xf32>
    %105 = arith.addf %104, %103 : vector<2x32xf32>
    %106 = arith.divf %104, %105 : vector<2x32xf32>
    %107 = vector.extract_strided_slice %97 {offsets = [0, 32], sizes = [2, 32], strides = [1, 1]} : vector<2x96xf32> to vector<2x32xf32>
    %108 = vector.extract_strided_slice %98 {offsets = [0, 32], sizes = [2, 32], strides = [1, 1]} : vector<2x96xf32> to vector<2x32xf32>
    %109 = arith.addf %107, %108 : vector<2x32xf32>
    %110 = arith.negf %109 : vector<2x32xf32>
    %111 = math.exp %110 : vector<2x32xf32>
    %cst_102 = arith.constant 1.000000e+00 : f32
    %112 = vector.broadcast %cst_102 : f32 to vector<2x32xf32>
    %113 = arith.addf %112, %111 : vector<2x32xf32>
    %114 = arith.divf %112, %113 : vector<2x32xf32>
    %115 = vector.extract_strided_slice %97 {offsets = [0, 64], sizes = [2, 32], strides = [1, 1]} : vector<2x96xf32> to vector<2x32xf32>
    %116 = vector.extract_strided_slice %98 {offsets = [0, 64], sizes = [2, 32], strides = [1, 1]} : vector<2x96xf32> to vector<2x32xf32>
    %117 = vector.broadcast %93 : vector<1x32xf32> to vector<2x32xf32>
    %118 = arith.addf %116, %117 : vector<2x32xf32>
    %119 = arith.mulf %106, %118 : vector<2x32xf32>
    %120 = arith.addf %115, %119 : vector<2x32xf32>
    %121 = math.tanh %120 : vector<2x32xf32>
    %cst_103 = arith.constant 1.000000e+00 : f32
    %122 = vector.broadcast %cst_103 : f32 to vector<2x32xf32>
    %123 = arith.subf %122, %114 : vector<2x32xf32>
    %124 = arith.mulf %123, %121 : vector<2x32xf32>
    %125 = arith.mulf %114, %95 : vector<2x32xf32>
    %126 = arith.addf %124, %125 : vector<2x32xf32>
    %127 = vector.extract_strided_slice %90 {offsets = [14, 0], sizes = [2, 96], strides = [1, 1]} : vector<16x96xf32> to vector<2x96xf32>
    %cst_104 = arith.constant dense<0.000000e+00> : vector<2x96xf32>
    %128 = tpu.matmul %96, %92, %cst_104 {dimension_numbers = #tpu.dot_dimension_numbers<[1], [0], [0], [1], [0, 0, 1, 1], [], []>} : vector<2x32xf32>, vector<32x96xf32>, vector<2x96xf32> -> vector<2x96xf32>
    %129 = vector.extract_strided_slice %127 {offsets = [0, 0], sizes = [2, 32], strides = [1, 1]} : vector<2x96xf32> to vector<2x32xf32>
    %130 = vector.extract_strided_slice %128 {offsets = [0, 0], sizes = [2, 32], strides = [1, 1]} : vector<2x96xf32> to vector<2x32xf32>
    %131 = arith.addf %129, %130 : vector<2x32xf32>
    %132 = arith.negf %131 : vector<2x32xf32>
    %133 = math.exp %132 : vector<2x32xf32>
    %cst_105 = arith.constant 1.000000e+00 : f32
    %134 = vector.broadcast %cst_105 : f32 to vector<2x32xf32>
    %135 = arith.addf %134, %133 : vector<2x32xf32>
    %136 = arith.divf %134, %135 : vector<2x32xf32>
    %137 = vector.extract_strided_slice %127 {offsets = [0, 32], sizes = [2, 32], strides = [1, 1]} : vector<2x96xf32> to vector<2x32xf32>
    %138 = vector.extract_strided_slice %128 {offsets = [0, 32], sizes = [2, 32], strides = [1, 1]} : vector<2x96xf32> to vector<2x32xf32>
    %139 = arith.addf %137, %138 : vector<2x32xf32>
    %140 = arith.negf %139 : vector<2x32xf32>
    %141 = math.exp %140 : vector<2x32xf32>
    %cst_106 = arith.constant 1.000000e+00 : f32
    %142 = vector.broadcast %cst_106 : f32 to vector<2x32xf32>
    %143 = arith.addf %142, %141 : vector<2x32xf32>
    %144 = arith.divf %142, %143 : vector<2x32xf32>
    %145 = vector.extract_strided_slice %127 {offsets = [0, 64], sizes = [2, 32], strides = [1, 1]} : vector<2x96xf32> to vector<2x32xf32>
    %146 = vector.extract_strided_slice %128 {offsets = [0, 64], sizes = [2, 32], strides = [1, 1]} : vector<2x96xf32> to vector<2x32xf32>
    %147 = vector.broadcast %94 : vector<1x32xf32> to vector<2x32xf32>
    %148 = arith.addf %146, %147 : vector<2x32xf32>
    %149 = arith.mulf %136, %148 : vector<2x32xf32>
    %150 = arith.addf %145, %149 : vector<2x32xf32>
    %151 = math.tanh %150 : vector<2x32xf32>
    %cst_107 = arith.constant 1.000000e+00 : f32
    %152 = vector.broadcast %cst_107 : f32 to vector<2x32xf32>
    %153 = arith.subf %152, %144 : vector<2x32xf32>
    %154 = arith.mulf %153, %151 : vector<2x32xf32>
    %155 = arith.mulf %144, %96 : vector<2x32xf32>
    %156 = arith.addf %154, %155 : vector<2x32xf32>
    %157 = vector.extract_strided_slice %85 {offsets = [2, 0], sizes = [2, 96], strides = [1, 1]} : vector<16x96xf32> to vector<2x96xf32>
    %cst_108 = arith.constant dense<0.000000e+00> : vector<2x96xf32>
    %158 = tpu.matmul %126, %91, %cst_108 {dimension_numbers = #tpu.dot_dimension_numbers<[1], [0], [0], [1], [0, 0, 1, 1], [], []>} : vector<2x32xf32>, vector<32x96xf32>, vector<2x96xf32> -> vector<2x96xf32>
    %159 = vector.extract_strided_slice %157 {offsets = [0, 0], sizes = [2, 32], strides = [1, 1]} : vector<2x96xf32> to vector<2x32xf32>
    %160 = vector.extract_strided_slice %158 {offsets = [0, 0], sizes = [2, 32], strides = [1, 1]} : vector<2x96xf32> to vector<2x32xf32>
    %161 = arith.addf %159, %160 : vector<2x32xf32>
    %162 = arith.negf %161 : vector<2x32xf32>
    %163 = math.exp %162 : vector<2x32xf32>
    %cst_109 = arith.constant 1.000000e+00 : f32
    %164 = vector.broadcast %cst_109 : f32 to vector<2x32xf32>
    %165 = arith.addf %164, %163 : vector<2x32xf32>
    %166 = arith.divf %164, %165 : vector<2x32xf32>
    %167 = vector.extract_strided_slice %157 {offsets = [0, 32], sizes = [2, 32], strides = [1, 1]} : vector<2x96xf32> to vector<2x32xf32>
    %168 = vector.extract_strided_slice %158 {offsets = [0, 32], sizes = [2, 32], strides = [1, 1]} : vector<2x96xf32> to vector<2x32xf32>
    %169 = arith.addf %167, %168 : vector<2x32xf32>
    %170 = arith.negf %169 : vector<2x32xf32>
    %171 = math.exp %170 : vector<2x32xf32>
    %cst_110 = arith.constant 1.000000e+00 : f32
    %172 = vector.broadcast %cst_110 : f32 to vector<2x32xf32>
    %173 = arith.addf %172, %171 : vector<2x32xf32>
    %174 = arith.divf %172, %173 : vector<2x32xf32>
    %175 = vector.extract_strided_slice %157 {offsets = [0, 64], sizes = [2, 32], strides = [1, 1]} : vector<2x96xf32> to vector<2x32xf32>
    %176 = vector.extract_strided_slice %158 {offsets = [0, 64], sizes = [2, 32], strides = [1, 1]} : vector<2x96xf32> to vector<2x32xf32>
    %177 = vector.broadcast %93 : vector<1x32xf32> to vector<2x32xf32>
    %178 = arith.addf %176, %177 : vector<2x32xf32>
    %179 = arith.mulf %166, %178 : vector<2x32xf32>
    %180 = arith.addf %175, %179 : vector<2x32xf32>
    %181 = math.tanh %180 : vector<2x32xf32>
    %cst_111 = arith.constant 1.000000e+00 : f32
    %182 = vector.broadcast %cst_111 : f32 to vector<2x32xf32>
    %183 = arith.subf %182, %174 : vector<2x32xf32>
    %184 = arith.mulf %183, %181 : vector<2x32xf32>
    %185 = arith.mulf %174, %126 : vector<2x32xf32>
    %186 = arith.addf %184, %185 : vector<2x32xf32>
    %187 = vector.extract_strided_slice %90 {offsets = [12, 0], sizes = [2, 96], strides = [1, 1]} : vector<16x96xf32> to vector<2x96xf32>
    %cst_112 = arith.constant dense<0.000000e+00> : vector<2x96xf32>
    %188 = tpu.matmul %156, %92, %cst_112 {dimension_numbers = #tpu.dot_dimension_numbers<[1], [0], [0], [1], [0, 0, 1, 1], [], []>} : vector<2x32xf32>, vector<32x96xf32>, vector<2x96xf32> -> vector<2x96xf32>
    %189 = vector.extract_strided_slice %187 {offsets = [0, 0], sizes = [2, 32], strides = [1, 1]} : vector<2x96xf32> to vector<2x32xf32>
    %190 = vector.extract_strided_slice %188 {offsets = [0, 0], sizes = [2, 32], strides = [1, 1]} : vector<2x96xf32> to vector<2x32xf32>
    %191 = arith.addf %189, %190 : vector<2x32xf32>
    %192 = arith.negf %191 : vector<2x32xf32>
    %193 = math.exp %192 : vector<2x32xf32>
    %cst_113 = arith.constant 1.000000e+00 : f32
    %194 = vector.broadcast %cst_113 : f32 to vector<2x32xf32>
    %195 = arith.addf %194, %193 : vector<2x32xf32>
    %196 = arith.divf %194, %195 : vector<2x32xf32>
    %197 = vector.extract_strided_slice %187 {offsets = [0, 32], sizes = [2, 32], strides = [1, 1]} : vector<2x96xf32> to vector<2x32xf32>
    %198 = vector.extract_strided_slice %188 {offsets = [0, 32], sizes = [2, 32], strides = [1, 1]} : vector<2x96xf32> to vector<2x32xf32>
    %199 = arith.addf %197, %198 : vector<2x32xf32>
    %200 = arith.negf %199 : vector<2x32xf32>
    %201 = math.exp %200 : vector<2x32xf32>
    %cst_114 = arith.constant 1.000000e+00 : f32
    %202 = vector.broadcast %cst_114 : f32 to vector<2x32xf32>
    %203 = arith.addf %202, %201 : vector<2x32xf32>
    %204 = arith.divf %202, %203 : vector<2x32xf32>
    %205 = vector.extract_strided_slice %187 {offsets = [0, 64], sizes = [2, 32], strides = [1, 1]} : vector<2x96xf32> to vector<2x32xf32>
    %206 = vector.extract_strided_slice %188 {offsets = [0, 64], sizes = [2, 32], strides = [1, 1]} : vector<2x96xf32> to vector<2x32xf32>
    %207 = vector.broadcast %94 : vector<1x32xf32> to vector<2x32xf32>
    %208 = arith.addf %206, %207 : vector<2x32xf32>
    %209 = arith.mulf %196, %208 : vector<2x32xf32>
    %210 = arith.addf %205, %209 : vector<2x32xf32>
    %211 = math.tanh %210 : vector<2x32xf32>
    %cst_115 = arith.constant 1.000000e+00 : f32
    %212 = vector.broadcast %cst_115 : f32 to vector<2x32xf32>
    %213 = arith.subf %212, %204 : vector<2x32xf32>
    %214 = arith.mulf %213, %211 : vector<2x32xf32>
    %215 = arith.mulf %204, %156 : vector<2x32xf32>
    %216 = arith.addf %214, %215 : vector<2x32xf32>
    %217 = vector.extract_strided_slice %85 {offsets = [4, 0], sizes = [2, 96], strides = [1, 1]} : vector<16x96xf32> to vector<2x96xf32>
    %cst_116 = arith.constant dense<0.000000e+00> : vector<2x96xf32>
    %218 = tpu.matmul %186, %91, %cst_116 {dimension_numbers = #tpu.dot_dimension_numbers<[1], [0], [0], [1], [0, 0, 1, 1], [], []>} : vector<2x32xf32>, vector<32x96xf32>, vector<2x96xf32> -> vector<2x96xf32>
    %219 = vector.extract_strided_slice %217 {offsets = [0, 0], sizes = [2, 32], strides = [1, 1]} : vector<2x96xf32> to vector<2x32xf32>
    %220 = vector.extract_strided_slice %218 {offsets = [0, 0], sizes = [2, 32], strides = [1, 1]} : vector<2x96xf32> to vector<2x32xf32>
    %221 = arith.addf %219, %220 : vector<2x32xf32>
    %222 = arith.negf %221 : vector<2x32xf32>
    %223 = math.exp %222 : vector<2x32xf32>
    %cst_117 = arith.constant 1.000000e+00 : f32
    %224 = vector.broadcast %cst_117 : f32 to vector<2x32xf32>
    %225 = arith.addf %224, %223 : vector<2x32xf32>
    %226 = arith.divf %224, %225 : vector<2x32xf32>
    %227 = vector.extract_strided_slice %217 {offsets = [0, 32], sizes = [2, 32], strides = [1, 1]} : vector<2x96xf32> to vector<2x32xf32>
    %228 = vector.extract_strided_slice %218 {offsets = [0, 32], sizes = [2, 32], strides = [1, 1]} : vector<2x96xf32> to vector<2x32xf32>
    %229 = arith.addf %227, %228 : vector<2x32xf32>
    %230 = arith.negf %229 : vector<2x32xf32>
    %231 = math.exp %230 : vector<2x32xf32>
    %cst_118 = arith.constant 1.000000e+00 : f32
    %232 = vector.broadcast %cst_118 : f32 to vector<2x32xf32>
    %233 = arith.addf %232, %231 : vector<2x32xf32>
    %234 = arith.divf %232, %233 : vector<2x32xf32>
    %235 = vector.extract_strided_slice %217 {offsets = [0, 64], sizes = [2, 32], strides = [1, 1]} : vector<2x96xf32> to vector<2x32xf32>
    %236 = vector.extract_strided_slice %218 {offsets = [0, 64], sizes = [2, 32], strides = [1, 1]} : vector<2x96xf32> to vector<2x32xf32>
    %237 = vector.broadcast %93 : vector<1x32xf32> to vector<2x32xf32>
    %238 = arith.addf %236, %237 : vector<2x32xf32>
    %239 = arith.mulf %226, %238 : vector<2x32xf32>
    %240 = arith.addf %235, %239 : vector<2x32xf32>
    %241 = math.tanh %240 : vector<2x32xf32>
    %cst_119 = arith.constant 1.000000e+00 : f32
    %242 = vector.broadcast %cst_119 : f32 to vector<2x32xf32>
    %243 = arith.subf %242, %234 : vector<2x32xf32>
    %244 = arith.mulf %243, %241 : vector<2x32xf32>
    %245 = arith.mulf %234, %186 : vector<2x32xf32>
    %246 = arith.addf %244, %245 : vector<2x32xf32>
    %247 = vector.extract_strided_slice %90 {offsets = [10, 0], sizes = [2, 96], strides = [1, 1]} : vector<16x96xf32> to vector<2x96xf32>
    %cst_120 = arith.constant dense<0.000000e+00> : vector<2x96xf32>
    %248 = tpu.matmul %216, %92, %cst_120 {dimension_numbers = #tpu.dot_dimension_numbers<[1], [0], [0], [1], [0, 0, 1, 1], [], []>} : vector<2x32xf32>, vector<32x96xf32>, vector<2x96xf32> -> vector<2x96xf32>
    %249 = vector.extract_strided_slice %247 {offsets = [0, 0], sizes = [2, 32], strides = [1, 1]} : vector<2x96xf32> to vector<2x32xf32>
    %250 = vector.extract_strided_slice %248 {offsets = [0, 0], sizes = [2, 32], strides = [1, 1]} : vector<2x96xf32> to vector<2x32xf32>
    %251 = arith.addf %249, %250 : vector<2x32xf32>
    %252 = arith.negf %251 : vector<2x32xf32>
    %253 = math.exp %252 : vector<2x32xf32>
    %cst_121 = arith.constant 1.000000e+00 : f32
    %254 = vector.broadcast %cst_121 : f32 to vector<2x32xf32>
    %255 = arith.addf %254, %253 : vector<2x32xf32>
    %256 = arith.divf %254, %255 : vector<2x32xf32>
    %257 = vector.extract_strided_slice %247 {offsets = [0, 32], sizes = [2, 32], strides = [1, 1]} : vector<2x96xf32> to vector<2x32xf32>
    %258 = vector.extract_strided_slice %248 {offsets = [0, 32], sizes = [2, 32], strides = [1, 1]} : vector<2x96xf32> to vector<2x32xf32>
    %259 = arith.addf %257, %258 : vector<2x32xf32>
    %260 = arith.negf %259 : vector<2x32xf32>
    %261 = math.exp %260 : vector<2x32xf32>
    %cst_122 = arith.constant 1.000000e+00 : f32
    %262 = vector.broadcast %cst_122 : f32 to vector<2x32xf32>
    %263 = arith.addf %262, %261 : vector<2x32xf32>
    %264 = arith.divf %262, %263 : vector<2x32xf32>
    %265 = vector.extract_strided_slice %247 {offsets = [0, 64], sizes = [2, 32], strides = [1, 1]} : vector<2x96xf32> to vector<2x32xf32>
    %266 = vector.extract_strided_slice %248 {offsets = [0, 64], sizes = [2, 32], strides = [1, 1]} : vector<2x96xf32> to vector<2x32xf32>
    %267 = vector.broadcast %94 : vector<1x32xf32> to vector<2x32xf32>
    %268 = arith.addf %266, %267 : vector<2x32xf32>
    %269 = arith.mulf %256, %268 : vector<2x32xf32>
    %270 = arith.addf %265, %269 : vector<2x32xf32>
    %271 = math.tanh %270 : vector<2x32xf32>
    %cst_123 = arith.constant 1.000000e+00 : f32
    %272 = vector.broadcast %cst_123 : f32 to vector<2x32xf32>
    %273 = arith.subf %272, %264 : vector<2x32xf32>
    %274 = arith.mulf %273, %271 : vector<2x32xf32>
    %275 = arith.mulf %264, %216 : vector<2x32xf32>
    %276 = arith.addf %274, %275 : vector<2x32xf32>
    %277 = vector.extract_strided_slice %85 {offsets = [6, 0], sizes = [2, 96], strides = [1, 1]} : vector<16x96xf32> to vector<2x96xf32>
    %cst_124 = arith.constant dense<0.000000e+00> : vector<2x96xf32>
    %278 = tpu.matmul %246, %91, %cst_124 {dimension_numbers = #tpu.dot_dimension_numbers<[1], [0], [0], [1], [0, 0, 1, 1], [], []>} : vector<2x32xf32>, vector<32x96xf32>, vector<2x96xf32> -> vector<2x96xf32>
    %279 = vector.extract_strided_slice %277 {offsets = [0, 0], sizes = [2, 32], strides = [1, 1]} : vector<2x96xf32> to vector<2x32xf32>
    %280 = vector.extract_strided_slice %278 {offsets = [0, 0], sizes = [2, 32], strides = [1, 1]} : vector<2x96xf32> to vector<2x32xf32>
    %281 = arith.addf %279, %280 : vector<2x32xf32>
    %282 = arith.negf %281 : vector<2x32xf32>
    %283 = math.exp %282 : vector<2x32xf32>
    %cst_125 = arith.constant 1.000000e+00 : f32
    %284 = vector.broadcast %cst_125 : f32 to vector<2x32xf32>
    %285 = arith.addf %284, %283 : vector<2x32xf32>
    %286 = arith.divf %284, %285 : vector<2x32xf32>
    %287 = vector.extract_strided_slice %277 {offsets = [0, 32], sizes = [2, 32], strides = [1, 1]} : vector<2x96xf32> to vector<2x32xf32>
    %288 = vector.extract_strided_slice %278 {offsets = [0, 32], sizes = [2, 32], strides = [1, 1]} : vector<2x96xf32> to vector<2x32xf32>
    %289 = arith.addf %287, %288 : vector<2x32xf32>
    %290 = arith.negf %289 : vector<2x32xf32>
    %291 = math.exp %290 : vector<2x32xf32>
    %cst_126 = arith.constant 1.000000e+00 : f32
    %292 = vector.broadcast %cst_126 : f32 to vector<2x32xf32>
    %293 = arith.addf %292, %291 : vector<2x32xf32>
    %294 = arith.divf %292, %293 : vector<2x32xf32>
    %295 = vector.extract_strided_slice %277 {offsets = [0, 64], sizes = [2, 32], strides = [1, 1]} : vector<2x96xf32> to vector<2x32xf32>
    %296 = vector.extract_strided_slice %278 {offsets = [0, 64], sizes = [2, 32], strides = [1, 1]} : vector<2x96xf32> to vector<2x32xf32>
    %297 = vector.broadcast %93 : vector<1x32xf32> to vector<2x32xf32>
    %298 = arith.addf %296, %297 : vector<2x32xf32>
    %299 = arith.mulf %286, %298 : vector<2x32xf32>
    %300 = arith.addf %295, %299 : vector<2x32xf32>
    %301 = math.tanh %300 : vector<2x32xf32>
    %cst_127 = arith.constant 1.000000e+00 : f32
    %302 = vector.broadcast %cst_127 : f32 to vector<2x32xf32>
    %303 = arith.subf %302, %294 : vector<2x32xf32>
    %304 = arith.mulf %303, %301 : vector<2x32xf32>
    %305 = arith.mulf %294, %246 : vector<2x32xf32>
    %306 = arith.addf %304, %305 : vector<2x32xf32>
    %307 = vector.extract_strided_slice %90 {offsets = [8, 0], sizes = [2, 96], strides = [1, 1]} : vector<16x96xf32> to vector<2x96xf32>
    %cst_128 = arith.constant dense<0.000000e+00> : vector<2x96xf32>
    %308 = tpu.matmul %276, %92, %cst_128 {dimension_numbers = #tpu.dot_dimension_numbers<[1], [0], [0], [1], [0, 0, 1, 1], [], []>} : vector<2x32xf32>, vector<32x96xf32>, vector<2x96xf32> -> vector<2x96xf32>
    %309 = vector.extract_strided_slice %307 {offsets = [0, 0], sizes = [2, 32], strides = [1, 1]} : vector<2x96xf32> to vector<2x32xf32>
    %310 = vector.extract_strided_slice %308 {offsets = [0, 0], sizes = [2, 32], strides = [1, 1]} : vector<2x96xf32> to vector<2x32xf32>
    %311 = arith.addf %309, %310 : vector<2x32xf32>
    %312 = arith.negf %311 : vector<2x32xf32>
    %313 = math.exp %312 : vector<2x32xf32>
    %cst_129 = arith.constant 1.000000e+00 : f32
    %314 = vector.broadcast %cst_129 : f32 to vector<2x32xf32>
    %315 = arith.addf %314, %313 : vector<2x32xf32>
    %316 = arith.divf %314, %315 : vector<2x32xf32>
    %317 = vector.extract_strided_slice %307 {offsets = [0, 32], sizes = [2, 32], strides = [1, 1]} : vector<2x96xf32> to vector<2x32xf32>
    %318 = vector.extract_strided_slice %308 {offsets = [0, 32], sizes = [2, 32], strides = [1, 1]} : vector<2x96xf32> to vector<2x32xf32>
    %319 = arith.addf %317, %318 : vector<2x32xf32>
    %320 = arith.negf %319 : vector<2x32xf32>
    %321 = math.exp %320 : vector<2x32xf32>
    %cst_130 = arith.constant 1.000000e+00 : f32
    %322 = vector.broadcast %cst_130 : f32 to vector<2x32xf32>
    %323 = arith.addf %322, %321 : vector<2x32xf32>
    %324 = arith.divf %322, %323 : vector<2x32xf32>
    %325 = vector.extract_strided_slice %307 {offsets = [0, 64], sizes = [2, 32], strides = [1, 1]} : vector<2x96xf32> to vector<2x32xf32>
    %326 = vector.extract_strided_slice %308 {offsets = [0, 64], sizes = [2, 32], strides = [1, 1]} : vector<2x96xf32> to vector<2x32xf32>
    %327 = vector.broadcast %94 : vector<1x32xf32> to vector<2x32xf32>
    %328 = arith.addf %326, %327 : vector<2x32xf32>
    %329 = arith.mulf %316, %328 : vector<2x32xf32>
    %330 = arith.addf %325, %329 : vector<2x32xf32>
    %331 = math.tanh %330 : vector<2x32xf32>
    %cst_131 = arith.constant 1.000000e+00 : f32
    %332 = vector.broadcast %cst_131 : f32 to vector<2x32xf32>
    %333 = arith.subf %332, %324 : vector<2x32xf32>
    %334 = arith.mulf %333, %331 : vector<2x32xf32>
    %335 = arith.mulf %324, %276 : vector<2x32xf32>
    %336 = arith.addf %334, %335 : vector<2x32xf32>
    %337 = vector.extract_strided_slice %85 {offsets = [8, 0], sizes = [2, 96], strides = [1, 1]} : vector<16x96xf32> to vector<2x96xf32>
    %cst_132 = arith.constant dense<0.000000e+00> : vector<2x96xf32>
    %338 = tpu.matmul %306, %91, %cst_132 {dimension_numbers = #tpu.dot_dimension_numbers<[1], [0], [0], [1], [0, 0, 1, 1], [], []>} : vector<2x32xf32>, vector<32x96xf32>, vector<2x96xf32> -> vector<2x96xf32>
    %339 = vector.extract_strided_slice %337 {offsets = [0, 0], sizes = [2, 32], strides = [1, 1]} : vector<2x96xf32> to vector<2x32xf32>
    %340 = vector.extract_strided_slice %338 {offsets = [0, 0], sizes = [2, 32], strides = [1, 1]} : vector<2x96xf32> to vector<2x32xf32>
    %341 = arith.addf %339, %340 : vector<2x32xf32>
    %342 = arith.negf %341 : vector<2x32xf32>
    %343 = math.exp %342 : vector<2x32xf32>
    %cst_133 = arith.constant 1.000000e+00 : f32
    %344 = vector.broadcast %cst_133 : f32 to vector<2x32xf32>
    %345 = arith.addf %344, %343 : vector<2x32xf32>
    %346 = arith.divf %344, %345 : vector<2x32xf32>
    %347 = vector.extract_strided_slice %337 {offsets = [0, 32], sizes = [2, 32], strides = [1, 1]} : vector<2x96xf32> to vector<2x32xf32>
    %348 = vector.extract_strided_slice %338 {offsets = [0, 32], sizes = [2, 32], strides = [1, 1]} : vector<2x96xf32> to vector<2x32xf32>
    %349 = arith.addf %347, %348 : vector<2x32xf32>
    %350 = arith.negf %349 : vector<2x32xf32>
    %351 = math.exp %350 : vector<2x32xf32>
    %cst_134 = arith.constant 1.000000e+00 : f32
    %352 = vector.broadcast %cst_134 : f32 to vector<2x32xf32>
    %353 = arith.addf %352, %351 : vector<2x32xf32>
    %354 = arith.divf %352, %353 : vector<2x32xf32>
    %355 = vector.extract_strided_slice %337 {offsets = [0, 64], sizes = [2, 32], strides = [1, 1]} : vector<2x96xf32> to vector<2x32xf32>
    %356 = vector.extract_strided_slice %338 {offsets = [0, 64], sizes = [2, 32], strides = [1, 1]} : vector<2x96xf32> to vector<2x32xf32>
    %357 = vector.broadcast %93 : vector<1x32xf32> to vector<2x32xf32>
    %358 = arith.addf %356, %357 : vector<2x32xf32>
    %359 = arith.mulf %346, %358 : vector<2x32xf32>
    %360 = arith.addf %355, %359 : vector<2x32xf32>
    %361 = math.tanh %360 : vector<2x32xf32>
    %cst_135 = arith.constant 1.000000e+00 : f32
    %362 = vector.broadcast %cst_135 : f32 to vector<2x32xf32>
    %363 = arith.subf %362, %354 : vector<2x32xf32>
    %364 = arith.mulf %363, %361 : vector<2x32xf32>
    %365 = arith.mulf %354, %306 : vector<2x32xf32>
    %366 = arith.addf %364, %365 : vector<2x32xf32>
    %367 = vector.extract_strided_slice %90 {offsets = [6, 0], sizes = [2, 96], strides = [1, 1]} : vector<16x96xf32> to vector<2x96xf32>
    %cst_136 = arith.constant dense<0.000000e+00> : vector<2x96xf32>
    %368 = tpu.matmul %336, %92, %cst_136 {dimension_numbers = #tpu.dot_dimension_numbers<[1], [0], [0], [1], [0, 0, 1, 1], [], []>} : vector<2x32xf32>, vector<32x96xf32>, vector<2x96xf32> -> vector<2x96xf32>
    %369 = vector.extract_strided_slice %367 {offsets = [0, 0], sizes = [2, 32], strides = [1, 1]} : vector<2x96xf32> to vector<2x32xf32>
    %370 = vector.extract_strided_slice %368 {offsets = [0, 0], sizes = [2, 32], strides = [1, 1]} : vector<2x96xf32> to vector<2x32xf32>
    %371 = arith.addf %369, %370 : vector<2x32xf32>
    %372 = arith.negf %371 : vector<2x32xf32>
    %373 = math.exp %372 : vector<2x32xf32>
    %cst_137 = arith.constant 1.000000e+00 : f32
    %374 = vector.broadcast %cst_137 : f32 to vector<2x32xf32>
    %375 = arith.addf %374, %373 : vector<2x32xf32>
    %376 = arith.divf %374, %375 : vector<2x32xf32>
    %377 = vector.extract_strided_slice %367 {offsets = [0, 32], sizes = [2, 32], strides = [1, 1]} : vector<2x96xf32> to vector<2x32xf32>
    %378 = vector.extract_strided_slice %368 {offsets = [0, 32], sizes = [2, 32], strides = [1, 1]} : vector<2x96xf32> to vector<2x32xf32>
    %379 = arith.addf %377, %378 : vector<2x32xf32>
    %380 = arith.negf %379 : vector<2x32xf32>
    %381 = math.exp %380 : vector<2x32xf32>
    %cst_138 = arith.constant 1.000000e+00 : f32
    %382 = vector.broadcast %cst_138 : f32 to vector<2x32xf32>
    %383 = arith.addf %382, %381 : vector<2x32xf32>
    %384 = arith.divf %382, %383 : vector<2x32xf32>
    %385 = vector.extract_strided_slice %367 {offsets = [0, 64], sizes = [2, 32], strides = [1, 1]} : vector<2x96xf32> to vector<2x32xf32>
    %386 = vector.extract_strided_slice %368 {offsets = [0, 64], sizes = [2, 32], strides = [1, 1]} : vector<2x96xf32> to vector<2x32xf32>
    %387 = vector.broadcast %94 : vector<1x32xf32> to vector<2x32xf32>
    %388 = arith.addf %386, %387 : vector<2x32xf32>
    %389 = arith.mulf %376, %388 : vector<2x32xf32>
    %390 = arith.addf %385, %389 : vector<2x32xf32>
    %391 = math.tanh %390 : vector<2x32xf32>
    %cst_139 = arith.constant 1.000000e+00 : f32
    %392 = vector.broadcast %cst_139 : f32 to vector<2x32xf32>
    %393 = arith.subf %392, %384 : vector<2x32xf32>
    %394 = arith.mulf %393, %391 : vector<2x32xf32>
    %395 = arith.mulf %384, %336 : vector<2x32xf32>
    %396 = arith.addf %394, %395 : vector<2x32xf32>
    %397 = vector.extract_strided_slice %85 {offsets = [10, 0], sizes = [2, 96], strides = [1, 1]} : vector<16x96xf32> to vector<2x96xf32>
    %cst_140 = arith.constant dense<0.000000e+00> : vector<2x96xf32>
    %398 = tpu.matmul %366, %91, %cst_140 {dimension_numbers = #tpu.dot_dimension_numbers<[1], [0], [0], [1], [0, 0, 1, 1], [], []>} : vector<2x32xf32>, vector<32x96xf32>, vector<2x96xf32> -> vector<2x96xf32>
    %399 = vector.extract_strided_slice %397 {offsets = [0, 0], sizes = [2, 32], strides = [1, 1]} : vector<2x96xf32> to vector<2x32xf32>
    %400 = vector.extract_strided_slice %398 {offsets = [0, 0], sizes = [2, 32], strides = [1, 1]} : vector<2x96xf32> to vector<2x32xf32>
    %401 = arith.addf %399, %400 : vector<2x32xf32>
    %402 = arith.negf %401 : vector<2x32xf32>
    %403 = math.exp %402 : vector<2x32xf32>
    %cst_141 = arith.constant 1.000000e+00 : f32
    %404 = vector.broadcast %cst_141 : f32 to vector<2x32xf32>
    %405 = arith.addf %404, %403 : vector<2x32xf32>
    %406 = arith.divf %404, %405 : vector<2x32xf32>
    %407 = vector.extract_strided_slice %397 {offsets = [0, 32], sizes = [2, 32], strides = [1, 1]} : vector<2x96xf32> to vector<2x32xf32>
    %408 = vector.extract_strided_slice %398 {offsets = [0, 32], sizes = [2, 32], strides = [1, 1]} : vector<2x96xf32> to vector<2x32xf32>
    %409 = arith.addf %407, %408 : vector<2x32xf32>
    %410 = arith.negf %409 : vector<2x32xf32>
    %411 = math.exp %410 : vector<2x32xf32>
    %cst_142 = arith.constant 1.000000e+00 : f32
    %412 = vector.broadcast %cst_142 : f32 to vector<2x32xf32>
    %413 = arith.addf %412, %411 : vector<2x32xf32>
    %414 = arith.divf %412, %413 : vector<2x32xf32>
    %415 = vector.extract_strided_slice %397 {offsets = [0, 64], sizes = [2, 32], strides = [1, 1]} : vector<2x96xf32> to vector<2x32xf32>
    %416 = vector.extract_strided_slice %398 {offsets = [0, 64], sizes = [2, 32], strides = [1, 1]} : vector<2x96xf32> to vector<2x32xf32>
    %417 = vector.broadcast %93 : vector<1x32xf32> to vector<2x32xf32>
    %418 = arith.addf %416, %417 : vector<2x32xf32>
    %419 = arith.mulf %406, %418 : vector<2x32xf32>
    %420 = arith.addf %415, %419 : vector<2x32xf32>
    %421 = math.tanh %420 : vector<2x32xf32>
    %cst_143 = arith.constant 1.000000e+00 : f32
    %422 = vector.broadcast %cst_143 : f32 to vector<2x32xf32>
    %423 = arith.subf %422, %414 : vector<2x32xf32>
    %424 = arith.mulf %423, %421 : vector<2x32xf32>
    %425 = arith.mulf %414, %366 : vector<2x32xf32>
    %426 = arith.addf %424, %425 : vector<2x32xf32>
    %427 = vector.extract_strided_slice %90 {offsets = [4, 0], sizes = [2, 96], strides = [1, 1]} : vector<16x96xf32> to vector<2x96xf32>
    %cst_144 = arith.constant dense<0.000000e+00> : vector<2x96xf32>
    %428 = tpu.matmul %396, %92, %cst_144 {dimension_numbers = #tpu.dot_dimension_numbers<[1], [0], [0], [1], [0, 0, 1, 1], [], []>} : vector<2x32xf32>, vector<32x96xf32>, vector<2x96xf32> -> vector<2x96xf32>
    %429 = vector.extract_strided_slice %427 {offsets = [0, 0], sizes = [2, 32], strides = [1, 1]} : vector<2x96xf32> to vector<2x32xf32>
    %430 = vector.extract_strided_slice %428 {offsets = [0, 0], sizes = [2, 32], strides = [1, 1]} : vector<2x96xf32> to vector<2x32xf32>
    %431 = arith.addf %429, %430 : vector<2x32xf32>
    %432 = arith.negf %431 : vector<2x32xf32>
    %433 = math.exp %432 : vector<2x32xf32>
    %cst_145 = arith.constant 1.000000e+00 : f32
    %434 = vector.broadcast %cst_145 : f32 to vector<2x32xf32>
    %435 = arith.addf %434, %433 : vector<2x32xf32>
    %436 = arith.divf %434, %435 : vector<2x32xf32>
    %437 = vector.extract_strided_slice %427 {offsets = [0, 32], sizes = [2, 32], strides = [1, 1]} : vector<2x96xf32> to vector<2x32xf32>
    %438 = vector.extract_strided_slice %428 {offsets = [0, 32], sizes = [2, 32], strides = [1, 1]} : vector<2x96xf32> to vector<2x32xf32>
    %439 = arith.addf %437, %438 : vector<2x32xf32>
    %440 = arith.negf %439 : vector<2x32xf32>
    %441 = math.exp %440 : vector<2x32xf32>
    %cst_146 = arith.constant 1.000000e+00 : f32
    %442 = vector.broadcast %cst_146 : f32 to vector<2x32xf32>
    %443 = arith.addf %442, %441 : vector<2x32xf32>
    %444 = arith.divf %442, %443 : vector<2x32xf32>
    %445 = vector.extract_strided_slice %427 {offsets = [0, 64], sizes = [2, 32], strides = [1, 1]} : vector<2x96xf32> to vector<2x32xf32>
    %446 = vector.extract_strided_slice %428 {offsets = [0, 64], sizes = [2, 32], strides = [1, 1]} : vector<2x96xf32> to vector<2x32xf32>
    %447 = vector.broadcast %94 : vector<1x32xf32> to vector<2x32xf32>
    %448 = arith.addf %446, %447 : vector<2x32xf32>
    %449 = arith.mulf %436, %448 : vector<2x32xf32>
    %450 = arith.addf %445, %449 : vector<2x32xf32>
    %451 = math.tanh %450 : vector<2x32xf32>
    %cst_147 = arith.constant 1.000000e+00 : f32
    %452 = vector.broadcast %cst_147 : f32 to vector<2x32xf32>
    %453 = arith.subf %452, %444 : vector<2x32xf32>
    %454 = arith.mulf %453, %451 : vector<2x32xf32>
    %455 = arith.mulf %444, %396 : vector<2x32xf32>
    %456 = arith.addf %454, %455 : vector<2x32xf32>
    %457 = vector.extract_strided_slice %85 {offsets = [12, 0], sizes = [2, 96], strides = [1, 1]} : vector<16x96xf32> to vector<2x96xf32>
    %cst_148 = arith.constant dense<0.000000e+00> : vector<2x96xf32>
    %458 = tpu.matmul %426, %91, %cst_148 {dimension_numbers = #tpu.dot_dimension_numbers<[1], [0], [0], [1], [0, 0, 1, 1], [], []>} : vector<2x32xf32>, vector<32x96xf32>, vector<2x96xf32> -> vector<2x96xf32>
    %459 = vector.extract_strided_slice %457 {offsets = [0, 0], sizes = [2, 32], strides = [1, 1]} : vector<2x96xf32> to vector<2x32xf32>
    %460 = vector.extract_strided_slice %458 {offsets = [0, 0], sizes = [2, 32], strides = [1, 1]} : vector<2x96xf32> to vector<2x32xf32>
    %461 = arith.addf %459, %460 : vector<2x32xf32>
    %462 = arith.negf %461 : vector<2x32xf32>
    %463 = math.exp %462 : vector<2x32xf32>
    %cst_149 = arith.constant 1.000000e+00 : f32
    %464 = vector.broadcast %cst_149 : f32 to vector<2x32xf32>
    %465 = arith.addf %464, %463 : vector<2x32xf32>
    %466 = arith.divf %464, %465 : vector<2x32xf32>
    %467 = vector.extract_strided_slice %457 {offsets = [0, 32], sizes = [2, 32], strides = [1, 1]} : vector<2x96xf32> to vector<2x32xf32>
    %468 = vector.extract_strided_slice %458 {offsets = [0, 32], sizes = [2, 32], strides = [1, 1]} : vector<2x96xf32> to vector<2x32xf32>
    %469 = arith.addf %467, %468 : vector<2x32xf32>
    %470 = arith.negf %469 : vector<2x32xf32>
    %471 = math.exp %470 : vector<2x32xf32>
    %cst_150 = arith.constant 1.000000e+00 : f32
    %472 = vector.broadcast %cst_150 : f32 to vector<2x32xf32>
    %473 = arith.addf %472, %471 : vector<2x32xf32>
    %474 = arith.divf %472, %473 : vector<2x32xf32>
    %475 = vector.extract_strided_slice %457 {offsets = [0, 64], sizes = [2, 32], strides = [1, 1]} : vector<2x96xf32> to vector<2x32xf32>
    %476 = vector.extract_strided_slice %458 {offsets = [0, 64], sizes = [2, 32], strides = [1, 1]} : vector<2x96xf32> to vector<2x32xf32>
    %477 = vector.broadcast %93 : vector<1x32xf32> to vector<2x32xf32>
    %478 = arith.addf %476, %477 : vector<2x32xf32>
    %479 = arith.mulf %466, %478 : vector<2x32xf32>
    %480 = arith.addf %475, %479 : vector<2x32xf32>
    %481 = math.tanh %480 : vector<2x32xf32>
    %cst_151 = arith.constant 1.000000e+00 : f32
    %482 = vector.broadcast %cst_151 : f32 to vector<2x32xf32>
    %483 = arith.subf %482, %474 : vector<2x32xf32>
    %484 = arith.mulf %483, %481 : vector<2x32xf32>
    %485 = arith.mulf %474, %426 : vector<2x32xf32>
    %486 = arith.addf %484, %485 : vector<2x32xf32>
    %487 = vector.extract_strided_slice %90 {offsets = [2, 0], sizes = [2, 96], strides = [1, 1]} : vector<16x96xf32> to vector<2x96xf32>
    %cst_152 = arith.constant dense<0.000000e+00> : vector<2x96xf32>
    %488 = tpu.matmul %456, %92, %cst_152 {dimension_numbers = #tpu.dot_dimension_numbers<[1], [0], [0], [1], [0, 0, 1, 1], [], []>} : vector<2x32xf32>, vector<32x96xf32>, vector<2x96xf32> -> vector<2x96xf32>
    %489 = vector.extract_strided_slice %487 {offsets = [0, 0], sizes = [2, 32], strides = [1, 1]} : vector<2x96xf32> to vector<2x32xf32>
    %490 = vector.extract_strided_slice %488 {offsets = [0, 0], sizes = [2, 32], strides = [1, 1]} : vector<2x96xf32> to vector<2x32xf32>
    %491 = arith.addf %489, %490 : vector<2x32xf32>
    %492 = arith.negf %491 : vector<2x32xf32>
    %493 = math.exp %492 : vector<2x32xf32>
    %cst_153 = arith.constant 1.000000e+00 : f32
    %494 = vector.broadcast %cst_153 : f32 to vector<2x32xf32>
    %495 = arith.addf %494, %493 : vector<2x32xf32>
    %496 = arith.divf %494, %495 : vector<2x32xf32>
    %497 = vector.extract_strided_slice %487 {offsets = [0, 32], sizes = [2, 32], strides = [1, 1]} : vector<2x96xf32> to vector<2x32xf32>
    %498 = vector.extract_strided_slice %488 {offsets = [0, 32], sizes = [2, 32], strides = [1, 1]} : vector<2x96xf32> to vector<2x32xf32>
    %499 = arith.addf %497, %498 : vector<2x32xf32>
    %500 = arith.negf %499 : vector<2x32xf32>
    %501 = math.exp %500 : vector<2x32xf32>
    %cst_154 = arith.constant 1.000000e+00 : f32
    %502 = vector.broadcast %cst_154 : f32 to vector<2x32xf32>
    %503 = arith.addf %502, %501 : vector<2x32xf32>
    %504 = arith.divf %502, %503 : vector<2x32xf32>
    %505 = vector.extract_strided_slice %487 {offsets = [0, 64], sizes = [2, 32], strides = [1, 1]} : vector<2x96xf32> to vector<2x32xf32>
    %506 = vector.extract_strided_slice %488 {offsets = [0, 64], sizes = [2, 32], strides = [1, 1]} : vector<2x96xf32> to vector<2x32xf32>
    %507 = vector.broadcast %94 : vector<1x32xf32> to vector<2x32xf32>
    %508 = arith.addf %506, %507 : vector<2x32xf32>
    %509 = arith.mulf %496, %508 : vector<2x32xf32>
    %510 = arith.addf %505, %509 : vector<2x32xf32>
    %511 = math.tanh %510 : vector<2x32xf32>
    %cst_155 = arith.constant 1.000000e+00 : f32
    %512 = vector.broadcast %cst_155 : f32 to vector<2x32xf32>
    %513 = arith.subf %512, %504 : vector<2x32xf32>
    %514 = arith.mulf %513, %511 : vector<2x32xf32>
    %515 = arith.mulf %504, %456 : vector<2x32xf32>
    %516 = arith.addf %514, %515 : vector<2x32xf32>
    %517 = vector.extract_strided_slice %85 {offsets = [14, 0], sizes = [2, 96], strides = [1, 1]} : vector<16x96xf32> to vector<2x96xf32>
    %cst_156 = arith.constant dense<0.000000e+00> : vector<2x96xf32>
    %518 = tpu.matmul %486, %91, %cst_156 {dimension_numbers = #tpu.dot_dimension_numbers<[1], [0], [0], [1], [0, 0, 1, 1], [], []>} : vector<2x32xf32>, vector<32x96xf32>, vector<2x96xf32> -> vector<2x96xf32>
    %519 = vector.extract_strided_slice %517 {offsets = [0, 0], sizes = [2, 32], strides = [1, 1]} : vector<2x96xf32> to vector<2x32xf32>
    %520 = vector.extract_strided_slice %518 {offsets = [0, 0], sizes = [2, 32], strides = [1, 1]} : vector<2x96xf32> to vector<2x32xf32>
    %521 = arith.addf %519, %520 : vector<2x32xf32>
    %522 = arith.negf %521 : vector<2x32xf32>
    %523 = math.exp %522 : vector<2x32xf32>
    %cst_157 = arith.constant 1.000000e+00 : f32
    %524 = vector.broadcast %cst_157 : f32 to vector<2x32xf32>
    %525 = arith.addf %524, %523 : vector<2x32xf32>
    %526 = arith.divf %524, %525 : vector<2x32xf32>
    %527 = vector.extract_strided_slice %517 {offsets = [0, 32], sizes = [2, 32], strides = [1, 1]} : vector<2x96xf32> to vector<2x32xf32>
    %528 = vector.extract_strided_slice %518 {offsets = [0, 32], sizes = [2, 32], strides = [1, 1]} : vector<2x96xf32> to vector<2x32xf32>
    %529 = arith.addf %527, %528 : vector<2x32xf32>
    %530 = arith.negf %529 : vector<2x32xf32>
    %531 = math.exp %530 : vector<2x32xf32>
    %cst_158 = arith.constant 1.000000e+00 : f32
    %532 = vector.broadcast %cst_158 : f32 to vector<2x32xf32>
    %533 = arith.addf %532, %531 : vector<2x32xf32>
    %534 = arith.divf %532, %533 : vector<2x32xf32>
    %535 = vector.extract_strided_slice %517 {offsets = [0, 64], sizes = [2, 32], strides = [1, 1]} : vector<2x96xf32> to vector<2x32xf32>
    %536 = vector.extract_strided_slice %518 {offsets = [0, 64], sizes = [2, 32], strides = [1, 1]} : vector<2x96xf32> to vector<2x32xf32>
    %537 = vector.broadcast %93 : vector<1x32xf32> to vector<2x32xf32>
    %538 = arith.addf %536, %537 : vector<2x32xf32>
    %539 = arith.mulf %526, %538 : vector<2x32xf32>
    %540 = arith.addf %535, %539 : vector<2x32xf32>
    %541 = math.tanh %540 : vector<2x32xf32>
    %cst_159 = arith.constant 1.000000e+00 : f32
    %542 = vector.broadcast %cst_159 : f32 to vector<2x32xf32>
    %543 = arith.subf %542, %534 : vector<2x32xf32>
    %544 = arith.mulf %543, %541 : vector<2x32xf32>
    %545 = arith.mulf %534, %486 : vector<2x32xf32>
    %546 = arith.addf %544, %545 : vector<2x32xf32>
    %547 = vector.extract_strided_slice %90 {offsets = [0, 0], sizes = [2, 96], strides = [1, 1]} : vector<16x96xf32> to vector<2x96xf32>
    %cst_160 = arith.constant dense<0.000000e+00> : vector<2x96xf32>
    %548 = tpu.matmul %516, %92, %cst_160 {dimension_numbers = #tpu.dot_dimension_numbers<[1], [0], [0], [1], [0, 0, 1, 1], [], []>} : vector<2x32xf32>, vector<32x96xf32>, vector<2x96xf32> -> vector<2x96xf32>
    %549 = vector.extract_strided_slice %547 {offsets = [0, 0], sizes = [2, 32], strides = [1, 1]} : vector<2x96xf32> to vector<2x32xf32>
    %550 = vector.extract_strided_slice %548 {offsets = [0, 0], sizes = [2, 32], strides = [1, 1]} : vector<2x96xf32> to vector<2x32xf32>
    %551 = arith.addf %549, %550 : vector<2x32xf32>
    %552 = arith.negf %551 : vector<2x32xf32>
    %553 = math.exp %552 : vector<2x32xf32>
    %cst_161 = arith.constant 1.000000e+00 : f32
    %554 = vector.broadcast %cst_161 : f32 to vector<2x32xf32>
    %555 = arith.addf %554, %553 : vector<2x32xf32>
    %556 = arith.divf %554, %555 : vector<2x32xf32>
    %557 = vector.extract_strided_slice %547 {offsets = [0, 32], sizes = [2, 32], strides = [1, 1]} : vector<2x96xf32> to vector<2x32xf32>
    %558 = vector.extract_strided_slice %548 {offsets = [0, 32], sizes = [2, 32], strides = [1, 1]} : vector<2x96xf32> to vector<2x32xf32>
    %559 = arith.addf %557, %558 : vector<2x32xf32>
    %560 = arith.negf %559 : vector<2x32xf32>
    %561 = math.exp %560 : vector<2x32xf32>
    %cst_162 = arith.constant 1.000000e+00 : f32
    %562 = vector.broadcast %cst_162 : f32 to vector<2x32xf32>
    %563 = arith.addf %562, %561 : vector<2x32xf32>
    %564 = arith.divf %562, %563 : vector<2x32xf32>
    %565 = vector.extract_strided_slice %547 {offsets = [0, 64], sizes = [2, 32], strides = [1, 1]} : vector<2x96xf32> to vector<2x32xf32>
    %566 = vector.extract_strided_slice %548 {offsets = [0, 64], sizes = [2, 32], strides = [1, 1]} : vector<2x96xf32> to vector<2x32xf32>
    %567 = vector.broadcast %94 : vector<1x32xf32> to vector<2x32xf32>
    %568 = arith.addf %566, %567 : vector<2x32xf32>
    %569 = arith.mulf %556, %568 : vector<2x32xf32>
    %570 = arith.addf %565, %569 : vector<2x32xf32>
    %571 = math.tanh %570 : vector<2x32xf32>
    %cst_163 = arith.constant 1.000000e+00 : f32
    %572 = vector.broadcast %cst_163 : f32 to vector<2x32xf32>
    %573 = arith.subf %572, %564 : vector<2x32xf32>
    %574 = arith.mulf %573, %571 : vector<2x32xf32>
    %575 = arith.mulf %564, %516 : vector<2x32xf32>
    %576 = arith.addf %574, %575 : vector<2x32xf32>
    %c0_164 = arith.constant 0 : index
    %c0_165 = arith.constant 0 : index
    %577 = vector.load %arg8[%c0_164, %c0_165] : memref<64x8xf32, #tpu.memory_space<vmem>>, vector<32x8xf32>
    %c32 = arith.constant 32 : index
    %c0_166 = arith.constant 0 : index
    %578 = vector.load %arg8[%c32, %c0_166] : memref<64x8xf32, #tpu.memory_space<vmem>>, vector<32x8xf32>
    %c0_167 = arith.constant 0 : index
    %c0_168 = arith.constant 0 : index
    %579 = vector.load %arg9[%c0_167, %c0_168] : memref<1x8xf32, #tpu.memory_space<vmem>>, vector<1x8xf32>
    %cst_169 = arith.constant dense<0.000000e+00> : vector<2x8xf32>
    %580 = tpu.matmul %126, %577, %cst_169 {dimension_numbers = #tpu.dot_dimension_numbers<[1], [0], [0], [1], [0, 0, 1, 1], [], []>} : vector<2x32xf32>, vector<32x8xf32>, vector<2x8xf32> -> vector<2x8xf32>
    %cst_170 = arith.constant dense<0.000000e+00> : vector<2x8xf32>
    %581 = tpu.matmul %576, %578, %cst_170 {dimension_numbers = #tpu.dot_dimension_numbers<[1], [0], [0], [1], [0, 0, 1, 1], [], []>} : vector<2x32xf32>, vector<32x8xf32>, vector<2x8xf32> -> vector<2x8xf32>
    %582 = arith.addf %580, %581 : vector<2x8xf32>
    %583 = vector.broadcast %579 : vector<1x8xf32> to vector<2x8xf32>
    %584 = arith.addf %582, %583 : vector<2x8xf32>
    %c0_171 = arith.constant 0 : index
    %c0_172 = arith.constant 0 : index
    %585 = vector.load %arg10[%c0_171, %c0_172] : memref<16x8xf32, #tpu.memory_space<vmem>>, vector<2x8xf32>
    tpu.vector_store %arg10[%c0_171, %c0_172], %584 {strides = array<i32>} : memref<16x8xf32, #tpu.memory_space<vmem>>, vector<2x8xf32>,
    %cst_173 = arith.constant dense<0.000000e+00> : vector<2x8xf32>
    %586 = tpu.matmul %186, %577, %cst_173 {dimension_numbers = #tpu.dot_dimension_numbers<[1], [0], [0], [1], [0, 0, 1, 1], [], []>} : vector<2x32xf32>, vector<32x8xf32>, vector<2x8xf32> -> vector<2x8xf32>
    %cst_174 = arith.constant dense<0.000000e+00> : vector<2x8xf32>
    %587 = tpu.matmul %516, %578, %cst_174 {dimension_numbers = #tpu.dot_dimension_numbers<[1], [0], [0], [1], [0, 0, 1, 1], [], []>} : vector<2x32xf32>, vector<32x8xf32>, vector<2x8xf32> -> vector<2x8xf32>
    %588 = arith.addf %586, %587 : vector<2x8xf32>
    %589 = vector.broadcast %579 : vector<1x8xf32> to vector<2x8xf32>
    %590 = arith.addf %588, %589 : vector<2x8xf32>
    %c2_175 = arith.constant 2 : index
    %c0_176 = arith.constant 0 : index
    %591 = vector.load %arg10[%c2_175, %c0_176] : memref<16x8xf32, #tpu.memory_space<vmem>>, vector<2x8xf32>
    tpu.vector_store %arg10[%c2_175, %c0_176], %590 {strides = array<i32>} : memref<16x8xf32, #tpu.memory_space<vmem>>, vector<2x8xf32>,
    %cst_177 = arith.constant dense<0.000000e+00> : vector<2x8xf32>
    %592 = tpu.matmul %246, %577, %cst_177 {dimension_numbers = #tpu.dot_dimension_numbers<[1], [0], [0], [1], [0, 0, 1, 1], [], []>} : vector<2x32xf32>, vector<32x8xf32>, vector<2x8xf32> -> vector<2x8xf32>
    %cst_178 = arith.constant dense<0.000000e+00> : vector<2x8xf32>
    %593 = tpu.matmul %456, %578, %cst_178 {dimension_numbers = #tpu.dot_dimension_numbers<[1], [0], [0], [1], [0, 0, 1, 1], [], []>} : vector<2x32xf32>, vector<32x8xf32>, vector<2x8xf32> -> vector<2x8xf32>
    %594 = arith.addf %592, %593 : vector<2x8xf32>
    %595 = vector.broadcast %579 : vector<1x8xf32> to vector<2x8xf32>
    %596 = arith.addf %594, %595 : vector<2x8xf32>
    %c4_179 = arith.constant 4 : index
    %c0_180 = arith.constant 0 : index
    %597 = vector.load %arg10[%c4_179, %c0_180] : memref<16x8xf32, #tpu.memory_space<vmem>>, vector<2x8xf32>
    tpu.vector_store %arg10[%c4_179, %c0_180], %596 {strides = array<i32>} : memref<16x8xf32, #tpu.memory_space<vmem>>, vector<2x8xf32>,
    %cst_181 = arith.constant dense<0.000000e+00> : vector<2x8xf32>
    %598 = tpu.matmul %306, %577, %cst_181 {dimension_numbers = #tpu.dot_dimension_numbers<[1], [0], [0], [1], [0, 0, 1, 1], [], []>} : vector<2x32xf32>, vector<32x8xf32>, vector<2x8xf32> -> vector<2x8xf32>
    %cst_182 = arith.constant dense<0.000000e+00> : vector<2x8xf32>
    %599 = tpu.matmul %396, %578, %cst_182 {dimension_numbers = #tpu.dot_dimension_numbers<[1], [0], [0], [1], [0, 0, 1, 1], [], []>} : vector<2x32xf32>, vector<32x8xf32>, vector<2x8xf32> -> vector<2x8xf32>
    %600 = arith.addf %598, %599 : vector<2x8xf32>
    %601 = vector.broadcast %579 : vector<1x8xf32> to vector<2x8xf32>
    %602 = arith.addf %600, %601 : vector<2x8xf32>
    %c6_183 = arith.constant 6 : index
    %c0_184 = arith.constant 0 : index
    %603 = vector.load %arg10[%c6_183, %c0_184] : memref<16x8xf32, #tpu.memory_space<vmem>>, vector<2x8xf32>
    tpu.vector_store %arg10[%c6_183, %c0_184], %602 {strides = array<i32>} : memref<16x8xf32, #tpu.memory_space<vmem>>, vector<2x8xf32>,
    %cst_185 = arith.constant dense<0.000000e+00> : vector<2x8xf32>
    %604 = tpu.matmul %366, %577, %cst_185 {dimension_numbers = #tpu.dot_dimension_numbers<[1], [0], [0], [1], [0, 0, 1, 1], [], []>} : vector<2x32xf32>, vector<32x8xf32>, vector<2x8xf32> -> vector<2x8xf32>
    %cst_186 = arith.constant dense<0.000000e+00> : vector<2x8xf32>
    %605 = tpu.matmul %336, %578, %cst_186 {dimension_numbers = #tpu.dot_dimension_numbers<[1], [0], [0], [1], [0, 0, 1, 1], [], []>} : vector<2x32xf32>, vector<32x8xf32>, vector<2x8xf32> -> vector<2x8xf32>
    %606 = arith.addf %604, %605 : vector<2x8xf32>
    %607 = vector.broadcast %579 : vector<1x8xf32> to vector<2x8xf32>
    %608 = arith.addf %606, %607 : vector<2x8xf32>
    %c8_187 = arith.constant 8 : index
    %c0_188 = arith.constant 0 : index
    %609 = vector.load %arg10[%c8_187, %c0_188] : memref<16x8xf32, #tpu.memory_space<vmem>>, vector<2x8xf32>
    tpu.vector_store %arg10[%c8_187, %c0_188], %608 {strides = array<i32>} : memref<16x8xf32, #tpu.memory_space<vmem>>, vector<2x8xf32>,
    %cst_189 = arith.constant dense<0.000000e+00> : vector<2x8xf32>
    %610 = tpu.matmul %426, %577, %cst_189 {dimension_numbers = #tpu.dot_dimension_numbers<[1], [0], [0], [1], [0, 0, 1, 1], [], []>} : vector<2x32xf32>, vector<32x8xf32>, vector<2x8xf32> -> vector<2x8xf32>
    %cst_190 = arith.constant dense<0.000000e+00> : vector<2x8xf32>
    %611 = tpu.matmul %276, %578, %cst_190 {dimension_numbers = #tpu.dot_dimension_numbers<[1], [0], [0], [1], [0, 0, 1, 1], [], []>} : vector<2x32xf32>, vector<32x8xf32>, vector<2x8xf32> -> vector<2x8xf32>
    %612 = arith.addf %610, %611 : vector<2x8xf32>
    %613 = vector.broadcast %579 : vector<1x8xf32> to vector<2x8xf32>
    %614 = arith.addf %612, %613 : vector<2x8xf32>
    %c10_191 = arith.constant 10 : index
    %c0_192 = arith.constant 0 : index
    %615 = vector.load %arg10[%c10_191, %c0_192] : memref<16x8xf32, #tpu.memory_space<vmem>>, vector<2x8xf32>
    tpu.vector_store %arg10[%c10_191, %c0_192], %614 {strides = array<i32>} : memref<16x8xf32, #tpu.memory_space<vmem>>, vector<2x8xf32>,
    %cst_193 = arith.constant dense<0.000000e+00> : vector<2x8xf32>
    %616 = tpu.matmul %486, %577, %cst_193 {dimension_numbers = #tpu.dot_dimension_numbers<[1], [0], [0], [1], [0, 0, 1, 1], [], []>} : vector<2x32xf32>, vector<32x8xf32>, vector<2x8xf32> -> vector<2x8xf32>
    %cst_194 = arith.constant dense<0.000000e+00> : vector<2x8xf32>
    %617 = tpu.matmul %216, %578, %cst_194 {dimension_numbers = #tpu.dot_dimension_numbers<[1], [0], [0], [1], [0, 0, 1, 1], [], []>} : vector<2x32xf32>, vector<32x8xf32>, vector<2x8xf32> -> vector<2x8xf32>
    %618 = arith.addf %616, %617 : vector<2x8xf32>
    %619 = vector.broadcast %579 : vector<1x8xf32> to vector<2x8xf32>
    %620 = arith.addf %618, %619 : vector<2x8xf32>
    %c12_195 = arith.constant 12 : index
    %c0_196 = arith.constant 0 : index
    %621 = vector.load %arg10[%c12_195, %c0_196] : memref<16x8xf32, #tpu.memory_space<vmem>>, vector<2x8xf32>
    tpu.vector_store %arg10[%c12_195, %c0_196], %620 {strides = array<i32>} : memref<16x8xf32, #tpu.memory_space<vmem>>, vector<2x8xf32>,
    %cst_197 = arith.constant dense<0.000000e+00> : vector<2x8xf32>
    %622 = tpu.matmul %546, %577, %cst_197 {dimension_numbers = #tpu.dot_dimension_numbers<[1], [0], [0], [1], [0, 0, 1, 1], [], []>} : vector<2x32xf32>, vector<32x8xf32>, vector<2x8xf32> -> vector<2x8xf32>
    %cst_198 = arith.constant dense<0.000000e+00> : vector<2x8xf32>
    %623 = tpu.matmul %156, %578, %cst_198 {dimension_numbers = #tpu.dot_dimension_numbers<[1], [0], [0], [1], [0, 0, 1, 1], [], []>} : vector<2x32xf32>, vector<32x8xf32>, vector<2x8xf32> -> vector<2x8xf32>
    %624 = arith.addf %622, %623 : vector<2x8xf32>
    %625 = vector.broadcast %579 : vector<1x8xf32> to vector<2x8xf32>
    %626 = arith.addf %624, %625 : vector<2x8xf32>
    %c14_199 = arith.constant 14 : index
    %c0_200 = arith.constant 0 : index
    %627 = vector.load %arg10[%c14_199, %c0_200] : memref<16x8xf32, #tpu.memory_space<vmem>>, vector<2x8xf32>
    tpu.vector_store %arg10[%c14_199, %c0_200], %626 {strides = array<i32>} : memref<16x8xf32, #tpu.memory_space<vmem>>, vector<2x8xf32>,
    return
  }
}

</mosaic_0001>

<bundles_post_ra>
// kernel: gru_ate_forward.1
= control target key start
LH: loop header
LB: loop body
LE: loop exit
PB: predicated region body
PF: predicated region fallthrough
CT: control target
= control target key end

     0   :  { %15 = vsyncpa [#allocation4], 0  ;;  %s4896_s0 = inlined_call_operand.vmem [shape: s32[2,8], index: 0, kind: input, shape index: {}]   ;;  %s4897_s1 = inlined_call_operand.vmem [shape: f32[50,1,32], index: 1, kind: input, shape index: {}]   ;;  %s4898_s2 = inlined_call_operand.vmem [shape: f32[32,96], index: 2, kind: input, shape index: {}]   ;;  %s4899_s3 = inlined_call_operand.vmem [shape: f32[32,96], index: 3, kind: input, shape index: {}]   ;;  %s4900_s4 = inlined_call_operand.vmem [shape: f32[2,96], index: 4, kind: input, shape index: {}]   ;;  %s4901_s5 = inlined_call_operand.vmem [shape: f32[32,96], index: 5, kind: input, shape index: {}]   ;;  %s4902_s6 = inlined_call_operand.vmem [shape: f32[32,96], index: 6, kind: input, shape index: {}]   ;;  %s4903_s7 = inlined_call_operand.vmem [shape: f32[2,96], index: 7, kind: input, shape index: {}]   ;;  %s4904_s8 = inlined_call_operand.vmem [shape: f32[64,8], index: 8, kind: input, shape index: {}]   ;;  %s4905_s9 = inlined_call_operand.vmem [shape: f32[1,8], index: 9, kind: input, shape index: {}]   ;;  %s4906_s10 = inlined_call_operand.vmem [shape: f32[16,8], index: 10, kind: output, shape index: {}]  }
   0x1   :  { %s22_s15 = sshll.u32 %s4896_s0, 4  ;;  %s23_s15 = int_to_ptr.vmem [resolvable:$true] %s22_s15 }
   0x2   :  { %s4129_s16 = scalar_lea.vmem %s23_s15, 32  ;;  %p4134_p1 = scmp.lt.s32.totalorder %s23_s15, %s23_s15 }
   0x3   :  { %p4130_p0 = scmp.ne.s32.totalorder %s23_s15, %s4129_s16  ;;  %p4135_p2 = scmp.lt.s32.totalorder %s4129_s16, %s4129_s16 }
   0x5   :  { %p4136_p3 = por %p4135_p2, %p4134_p1 }
   0x7   :  { %p4137_p4 = pnand %p4136_p3, %p4130_p0 }
   0x9   :  { %4140 = shalt.err (!%p4137_p4)
}
   0xa   :  { %s4143_s17 = smov [#allocation3]  }
   0xb   :  { %25 = dma.vmem_to_smem %s23_s15, 32, %s4143_s17, [#allocation4]  }
   0xc   :  { %4141 = dma.done.wait [#allocation4], 32  }
   0xd   :  { %4142 = vsyncadd [#allocation4], 4294967264 }
   0xe   :  { %47 = sfence }
   0xf   :  { %v206_v0 = vld [vmem:[%s4901_s5] sm:$0xff]  ;;  %v207_v1 = vld [vmem:[%s4901_s5 + $0x8] sm:$0xff]  ;;  %v208_v2 = vld [vmem:[%s4901_s5 + $0x10] sm:$0xff]  ;;  %s48_s23 = sld [smem:[#allocation3]]  ;;  %s4225_s11 = sld [smem:[#allocation3 + $0x1]]  ;;  %vm51_vm0 = vcmask 253952  }
  0x10   :  { %v3825_v3 = vpack.c.bf16 %v207_v1, %v206_v0  ;;  %v209_v4 = vld [vmem:[%s4901_s5 + $0x18] sm:$0xff]  ;;  %v115_v5 = vld [vmem:[%s4898_s2] sm:$0xff]  ;;  %v116_v6 = vld [vmem:[%s4898_s2 + $0x8] sm:$0xff]  ;;  %s3201_s30 = sld [smem:[#allocation3 + $0x80]]  ;;  %s4227_s12 = sld [smem:[#allocation3 + $0x81]]  ;;  %v4144_v16 = vmov 0.0|0.0  }
  0x11   :  { %v3829_v7 = vpack.c.bf16 %v209_v4, %v208_v2  ;;  %v3817_v8 = vpack.c.bf16 %v116_v6, %v115_v5  ;;  %s4229_s13 = sld [smem:[#allocation3 + $0x2]]  ;;  %v117_v9 = vld [vmem:[%s4898_s2 + $0x10] sm:$0xff]  ;;  %s4236_s16 = sld [smem:[#allocation3 + $0x3]]  ;;  %v118_v10 = vld [vmem:[%s4898_s2 + $0x18] sm:$0xff]  ;;  %vm124_vm1 = vcmask 261120   ;;  %v294_v30 = vld [vmem:[%s4902_s6] sm:$0xff] }
  0x12   :  { %3826 = vmatprep.subr.bf16.mxu1 %v3825_v3  ;;  %s4231_s14 = sld [smem:[#allocation3 + $0x82]]  ;;  %s4238_s17 = sld [smem:[#allocation3 + $0x83]]  ;;  %v3821_v11 = vpack.c.bf16 %v118_v10, %v117_v9  ;;  %v295_v31 = vld [vmem:[%s4902_s6 + $0x8] sm:$0xff]  ;;  %v290_v32 = vld [vmem:[%s4899_s3] sm:$0xff]  ;;  %v296_v35 = vld [vmem:[%s4902_s6 + $0x10] sm:$0xff]  ;;  %vm4145_vm2 = vmmov 0  }
  0x13   :  { %3828 = vmatpush3.bf16.msra.mxu1 %v3825_v3  ;;  %3818 = vmatprep.subr.bf16.mxu0 %v3817_v8  ;;  %s4243_s20 = sld [smem:[#allocation3 + $0x4]]  ;;  %s4250_s25 = sld [smem:[#allocation3 + $0x5]]  ;;  %v291_v33 = vld [vmem:[%s4899_s3 + $0x8] sm:$0xff]  ;;  %v4341_v34 = vpack.c.bf16 %v295_v31, %v294_v30  ;;  %v297_v37 = vld [vmem:[%s4902_s6 + $0x18] sm:$0xff]  ;;  %v292_v38 = vld [vmem:[%s4899_s3 + $0x10] sm:$0xff]  ;;  %v4146_v43 = vmov 0.0  }
  0x14   :  { %3830 = vmatprep.subr.bf16.mxu1 %v3829_v7  ;;  %3820 = vmatpush3.bf16.msra.mxu0 %v3817_v8  ;;  %s4245_s21 = sld [smem:[#allocation3 + $0x84]]  ;;  %s4255_s28 = sld [smem:[#allocation3 + $0x85]]  ;;  %v4346_v36 = vpack.c.bf16 %v291_v33, %v290_v32  ;;  %v293_v39 = vld [vmem:[%s4899_s3 + $0x18] sm:$0xff]  ;;  %v4360_v41 = vpack.c.bf16 %v297_v37, %v296_v35  ;;  %v3216_v44 = vld [vmem:[%s4900_s4] ss:$0 sm:$0xff]  ;;  %vm2178_vm3 = vcmask 58368  }
  0x15   :  { %s49_s24 = scalar_lea.vmem %s4897_s1, %s48_s23  ;;  %3822 = vmatprep.subr.bf16.mxu0 %v3821_v11  ;;  %s58_s23 = scalar_lea.vmem %s4897_s1, %s4225_s11  ;;  %v4363_v42 = vpack.c.bf16 %v293_v39, %v292_v38  ;;  %v3219_v45 = vld [vmem:[%s4903_s7] ss:$0 sm:$0xff]  ;;  %v4402_v52 = vld [vmem:[%s4903_s7 + $0x1] ss:$0 sm:$0xff] }
  0x16   :  { %v50_v12 = vld [vmem:[%s49_s24] sm:$0x1]  ;;  %s54_s27 = scalar_lea.vmem %s4897_s1, %s3201_s30  ;;  %s62_s19 = scalar_lea.vmem %s4897_s1, %s4227_s12  ;;  %v4408_v58 = vld [vmem:[%s4900_s4 + $0x1] ss:$0 sm:$0xff] }
  0x17   :  { %3832 = vmatpush3.bf16.msra.mxu1 %v3829_v7  ;;  %52 = vst.msk [vmem:[#allocation2] sm:$0x1] %vm51_vm0, %v50_v12  ;;  %v55_v13 = vld [vmem:[%s54_s27] sm:$0x1]  ;;  %s66_s22 = scalar_lea.vmem %s4897_s1, %s4229_s13  ;;  %s74_s13 = scalar_lea.vmem %s4897_s1, %s4236_s16 }
  0x18   :  { %56 = vst.msk [vmem:[#allocation2 + $0x1] sm:$0x1] %vm51_vm0, %v55_v13  ;;  %v59_v14 = vld [vmem:[%s58_s23] sm:$0x1]  ;;  %s70_s26 = scalar_lea.vmem %s4897_s1, %s4231_s14  ;;  %3839 = vmatprep.subr.bf16.mxu1 %v4144_v16  ;;  %3824 = vmatpush3.bf16.msra.mxu0 %v3821_v11  ;;  %s78_s14 = scalar_lea.vmem %s4897_s1, %s4238_s17 }
  0x19   :  { %v63_v15 = vld [vmem:[%s62_s19] sm:$0x1]  ;;  %60 = vst.msk [vmem:[#allocation2 + $0x2] sm:$0x1] %vm51_vm0, %v59_v14  ;;  %3833 = vmatprep.subr.bf16.mxu0 %v4144_v16  ;;  %s82_s15 = scalar_lea.vmem %s4897_s1, %s4243_s20  ;;  %s90_s0 = scalar_lea.vmem %s4897_s1, %s4250_s25 }
  0x1a   :  { %64 = vst.msk [vmem:[#allocation2 + $0x3] sm:$0x1] %vm51_vm0, %v63_v15  ;;  %v67_v17 = vld [vmem:[%s66_s22] sm:$0x1]  ;;  %s86_s16 = scalar_lea.vmem %s4897_s1, %s4245_s21  ;;  %s3212_s22 = sld [smem:[#allocation3 + $0x6]] }
  0x1b   :  { %v71_v18 = vld [vmem:[%s70_s26] sm:$0x1]  ;;  %68 = vst.msk [vmem:[#allocation2 + $0x4] sm:$0x1] %vm51_vm0, %v67_v17  ;;  %s94_s21 = scalar_lea.vmem %s4897_s1, %s4255_s28  ;;  %s3213_s2 = sld [smem:[#allocation3 + $0x86]] }
  0x1c   :  { %72 = vst.msk [vmem:[#allocation2 + $0x5] sm:$0x1] %vm51_vm0, %v71_v18  ;;  %v75_v19 = vld [vmem:[%s74_s13] sm:$0x1]  ;;  %s3214_s26 = sld [smem:[#allocation3 + $0x7]]  ;;  %s4147_s18 = smov 64  }
  0x1d   :  { %v79_v20 = vld [vmem:[%s78_s14] sm:$0x1]  ;;  %76 = vst.msk [vmem:[#allocation2 + $0x6] sm:$0x1] %vm51_vm0, %v75_v19  ;;  %s3215_s11 = sld [smem:[#allocation3 + $0x87]] }
  0x1e   :  { %80 = vst.msk [vmem:[#allocation2 + $0x7] sm:$0x1] %vm51_vm0, %v79_v20  ;;  %v83_v21 = vld [vmem:[%s82_s15] sm:$0x1] }
  0x1f   :  { %v87_v22 = vld [vmem:[%s86_s16] sm:$0x1]  ;;  %84 = vst.msk [vmem:[#allocation2 + $0x8] sm:$0x1] %vm51_vm0, %v83_v21 }
  0x20   :  { %88 = vst.msk [vmem:[#allocation2 + $0x9] sm:$0x1] %vm51_vm0, %v87_v22  ;;  %v91_v23 = vld [vmem:[%s90_s0] sm:$0x1]  ;;  %s98_s13 = scalar_lea.vmem %s4897_s1, %s3212_s22 }
  0x21   :  { %92 = vst.msk [vmem:[#allocation2 + $0xa] sm:$0x1] %vm51_vm0, %v91_v23  ;;  %v95_v24 = vld [vmem:[%s94_s21] sm:$0x1]  ;;  %s102_s14 = scalar_lea.vmem %s4897_s1, %s3213_s2 }
  0x22   :  { %96 = vst.msk [vmem:[#allocation2 + $0xb] sm:$0x1] %vm51_vm0, %v95_v24  ;;  %v99_v26 = vld [vmem:[%s98_s13] sm:$0x1]  ;;  %s106_s23 = scalar_lea.vmem %s4897_s1, %s3214_s26 }
  0x23   :  { %100 = vst.msk [vmem:[#allocation2 + $0xc] sm:$0x1] %vm51_vm0, %v99_v26  ;;  %v103_v27 = vld [vmem:[%s102_s14] sm:$0x1]  ;;  %s110_s19 = scalar_lea.vmem %s4897_s1, %s3215_s11 }
  0x24   :  { %104 = vst.msk [vmem:[#allocation2 + $0xd] sm:$0x1] %vm51_vm0, %v103_v27  ;;  %v107_v28 = vld [vmem:[%s106_s23] sm:$0x1] }
  0x25   :  { %v113_v25 = vld [vmem:[#allocation2] sm:$0xff]  ;;  %108 = vst.msk [vmem:[#allocation2 + $0xe] sm:$0x1] %vm51_vm0, %v107_v28 }
  0x26   :  { %3462 = vmatprep.mubr.msk.f32.mxu1 %vm124_vm1, %v113_v25  ;;  %3451 = vmatprep.mubr.msk.f32.mxu0 %vm124_vm1, %v113_v25  ;;  %v111_v29 = vld [vmem:[%s110_s19] sm:$0x1]  ;;  %s4148_s19 = smov 96  }
  0x27   :  { %112 = vst.msk [vmem:[#allocation2 + $0xf] sm:$0x1] %vm51_vm0, %v111_v29 }
  0x2e   :  { %v114_v40 = vld [vmem:[#allocation2 + $0x8] sm:$0xff] }
  0x2f   :  { %3463 = vmatmul.mubr.msk.f32.vlgmr.msra.gmra.mrb[0].mxu1 %vm124_vm1, %v114_v40  ;;  %3452 = vmatmul.mubr.msk.f32.vlgmr.msra.gmra.mrb[0].mxu0 %vm124_vm1, %v114_v40 }
  0x30   :  { %3841 = vmatpush3.bf16.msra.mxu1 %v4341_v34  ;;  %3835 = vmatpush3.bf16.msra.mxu0 %v4346_v36 }
  0x31   :  { %3842 = vmatprep.subr.bf16.mxu1 %v4144_v16  ;;  %3484 = vmatprep.mubr.msk.f32.mxu1 %vm4145_vm2, %v4146_v43 }
  0x32   :  { %3836 = vmatprep.subr.bf16.mxu0 %v4144_v16  ;;  %3473 = vmatprep.mubr.msk.f32.mxu0 %vm4145_vm2, %v4146_v43 }
  0x34   :  { %3844 = vmatpush3.bf16.msra.mxu1 %v4360_v41  ;;  %3838 = vmatpush3.bf16.msra.mxu0 %v4363_v42 }
  0x35   :  { %3851 = vmatprep.subr.bf16.mxu1 %v4144_v16  ;;  %3845 = vmatprep.subr.bf16.mxu0 %v4144_v16 }
  0x37   :  { %3485 = vmatmul.mubr.f32.vlgmr.msra.gmra.mrb[2].mxu1 %v4146_v43  ;;  %3474 = vmatmul.mubr.f32.vlgmr.msra.gmra.mrb[2].mxu0 %v4146_v43 }
  0x38   :  { %3853 = vmatpush3.bf16.msra.mxu1 %v4341_v34  ;;  %3847 = vmatpush3.bf16.msra.mxu0 %v4346_v36 }
  0x39   :  { %3854 = vmatprep.subr.bf16.mxu1 %v4144_v16  ;;  %3848 = vmatprep.subr.bf16.mxu0 %v4144_v16 }
  0x3a   :  { %3506 = vmatprep.mubr.msk.f32.mxu1 %vm4145_vm2, %v4146_v43  ;;  %3495 = vmatprep.mubr.msk.f32.mxu0 %vm4145_vm2, %v4146_v43 }
  0x3c   :  { %3856 = vmatpush3.bf16.msra.mxu1 %v4360_v41  ;;  %3850 = vmatpush3.bf16.msra.mxu0 %v4363_v42 }
  0x3d   :  { %3863 = vmatprep.subr.bf16.mxu1 %v4144_v16  ;;  %3857 = vmatprep.subr.bf16.mxu0 %v4144_v16 }
 0x102   :  { %v3464_v46 = vpop.f32.mrb[0].mxu1  ;;  %v3453_v47 = vpop.f32.mrb[0].mxu0 }
 0x103   :  { %v281_v48 = vpop.f32.mrb[1].mxu1  ;;  %v4395_v49 = vadd.f32 %v3453_v47, %v3216_v44  ;;  %v197_v50 = vpop.f32.mrb[1].mxu0  ;;  %v4413_v62 = vadd.f32 %v3464_v46, %v3219_v45 }
 0x104   :  { %v4397_v51 = vadd.f32 %v3219_v45, %v281_v48  ;;  %v4416_v0 = vadd.f32 %v3216_v44, %v197_v50 }
 0x10a   :  { %v470_v53 = vpop.f32.mrb[2].mxu1  ;;  %v369_v54 = vpop.f32.mrb[2].mxu0 }
 0x10b   :  { %v488_v55 = vadd.f32 %v4402_v52, %v470_v53  ;;  %v3486_v56 = vpop.f32.mrb[3].mxu1  ;;  %v3475_v57 = vpop.f32.mrb[3].mxu0  ;;  %v384_v60 = vadd.f32 %v4408_v58, %v369_v54  ;;  %v475_v61 = vrot.slane %v470_v53, 2  ;;  %v373_v2 = vadd.f32 %v369_v54, %v4416_v0 }
 0x10d   :  { %v490_v59 = vrot.slane %v488_v55, 2  ;;  %v477_v63 = vadd.f32 %v475_v61, %v4413_v62  ;;  %v3222_v3 = vmul.f32 -1.442695, %v373_v2 }
 0x10f   :  { %491 = vrot.lane.b32.xlu0 %v490_v59, %s4147_s18  ;;  %v3224_v1 = vmul.f32 -1.442695, %v477_v63 }
 0x111   :  { %4031 = vpow2.f32 %v3224_v1 }
 0x112   :  { %4033 = vpow2.f32 %v3222_v3 }
 0x113   :  { %386 = vrot.lane.b32.xlu0 %v384_v60, %s4147_s18 }
 0x11b   :  { %v4032_v4 = vpop.eup %4031 }
 0x11c   :  { %v481_v5 = vadd.f32 1.0, %v4032_v4  ;;  %v4034_v6 = vpop.eup %4033 }
 0x11d   :  { %v377_v7 = vadd.f32 1.0, %v4034_v6 }
 0x11e   :  { %4035 = vrcp.f32 %v481_v5 }
 0x11f   :  { %4037 = vrcp.f32 %v377_v7 }
 0x128   :  { %v4036_v8 = vpop.eup %4035 }
 0x129   :  { %v4038_v11 = vpop.eup %4037  ;;  %v501_v21 = vsub.f32 1.0, %v4036_v8  ;;  %v507_v23 = vmul.f32 0.0, %v4036_v8 }
 0x12a   :  { %v396_v26 = vsub.f32 1.0, %v4038_v11  ;;  %v402_v28 = vmul.f32 0.0, %v4038_v11 }
 0x181   :  { %v492_v9 = vpop.permute.xlu0 %491 }
 0x182   :  { %v494_v10 = vmul.f32 %v4036_v8, %v492_v9 }
 0x184   :  { %496 = vrot.lane.b32.xlu1 %v494_v10, %s4147_s18 }
 0x185   :  { %v387_v12 = vpop.permute.xlu0 %386 }
 0x186   :  { %v389_v13 = vmul.f32 %v4038_v11, %v387_v12 }
 0x188   :  { %391 = vrot.lane.b32.xlu1 %v389_v13, %s4147_s18 }
 0x1f6   :  { %v497_v14 = vpop.permute.xlu1 %496 }
 0x1f7   :  { %v499_v15 = vadd.f32 %v497_v14, %v4413_v62 }
 0x1f9   :  { %4039 = vtanh.f32 %v499_v15 }
 0x1fa   :  { %v392_v17 = vpop.permute.xlu1 %391 }
 0x1fb   :  { %v394_v18 = vadd.f32 %v392_v17, %v4416_v0 }
 0x1fd   :  { %4041 = vtanh.f32 %v394_v18 }
 0x203   :  { %v4040_v19 = vpop.eup %4039 }
 0x204   :  { %503 = vrot.lane.b32.xlu0 %v4040_v19, %s4148_s19 }
 0x207   :  { %v4042_v20 = vpop.eup %4041 }
 0x208   :  { %398 = vrot.lane.b32.xlu1 %v4042_v20, %s4148_s19 }
 0x276   :  { %v504_v22 = vpop.permute.xlu0 %503 }
 0x277   :  { %v506_v24 = vmul.f32 %v504_v22, %v501_v21 }
 0x279   :  { %v4425_v25 = vadd.f32 %v507_v23, %v506_v24 }
 0x27a   :  { %v399_v27 = vpop.permute.xlu1 %398 }
 0x27b   :  { %v401_v29 = vmul.f32 %v399_v27, %v396_v26  ;;  %v618_v30 = vrot.slane %v4425_v25, 6  ;;  %v722_v11 = vrot.slane %v4425_v25, 2 }
 0x27d   :  { %v4428_v31 = vadd.f32 %v402_v28, %v401_v29  ;;  %619 = vrot.lane.b32.xlu0 %v618_v30, %s4148_s19 }
 0x27f   :  { %510 = vrot.lane.b32.xlu1 %v4428_v31, %s4148_s19  ;;  %v613_v14 = vrot.slane %v4428_v31, 6 }
 0x2ef   :  { %v4433_v32 = vpop.permute.xlu0 %619 }
 0x2f0   :  { %3507 = vmatmul.mubr.msk.f32.vlgmr.msra.gmra.mrb[4].mxu1 %vm124_vm1, %v4433_v32 }
 0x2f1   :  { %v4437_v33 = vpop.permute.xlu1 %510  ;;  %3865 = vmatpush3.bf16.msra.mxu1 %v4341_v34  ;;  %3528 = vmatprep.mubr.msk.f32.mxu1 %vm4145_vm2, %v4146_v43 }
 0x2f2   :  { %3496 = vmatmul.mubr.msk.f32.vlgmr.msra.gmra.mrb[4].mxu0 %vm124_vm1, %v4437_v33  ;;  %3866 = vmatprep.subr.bf16.mxu1 %v4144_v16 }
 0x2f3   :  { %3859 = vmatpush3.bf16.msra.mxu0 %v4346_v36  ;;  %3517 = vmatprep.mubr.msk.f32.mxu0 %vm4145_vm2, %v4146_v43 }
 0x2f4   :  { %3860 = vmatprep.subr.bf16.mxu0 %v4144_v16 }
 0x2f5   :  { %3868 = vmatpush3.bf16.msra.mxu1 %v4360_v41 }
 0x2f6   :  { %3875 = vmatprep.subr.bf16.mxu1 %v4144_v16 }
 0x2f7   :  { %3862 = vmatpush3.bf16.msra.mxu0 %v4363_v42 }
 0x2f8   :  { %3869 = vmatprep.subr.bf16.mxu0 %v4144_v16 }
 0x3c3   :  { %v689_v35 = vpop.f32.mrb[4].mxu1 }
 0x3c4   :  { %v703_v37 = vadd.f32 %v4402_v52, %v689_v35  ;;  %v3508_v38 = vpop.f32.mrb[5].mxu1  ;;  %v694_v47 = vrot.slane %v689_v35, 4 }
 0x3c5   :  { %v580_v39 = vpop.f32.mrb[4].mxu0 }
 0x3c6   :  { %v705_v40 = vrot.slane %v703_v37, 4  ;;  %v594_v44 = vadd.f32 %v4408_v58, %v580_v39  ;;  %v3497_v45 = vpop.f32.mrb[5].mxu0  ;;  %v585_v48 = vrot.slane %v580_v39, 6  ;;  %v696_v50 = vadd.f32 %v694_v47, %v4413_v62 }
 0x3c8   :  { %v596_v46 = vrot.slane %v594_v44, 6  ;;  %706 = vrot.lane.b32.xlu0 %v705_v40, %s4147_s18  ;;  %v587_v53 = vadd.f32 %v585_v48, %v4416_v0  ;;  %v3229_v54 = vmul.f32 -1.442695, %v696_v50 }
 0x3ca   :  { %597 = vrot.lane.b32.xlu1 %v596_v46, %s4147_s18  ;;  %v3227_v55 = vmul.f32 -1.442695, %v587_v53  ;;  %4043 = vpow2.f32 %v3229_v54 }
 0x3cc   :  { %4045 = vpow2.f32 %v3227_v55 }
 0x3d4   :  { %v4044_v56 = vpop.eup %4043 }
 0x3d5   :  { %v700_v59 = vadd.f32 1.0, %v4044_v56 }
 0x3d6   :  { %v4046_v57 = vpop.eup %4045 }
 0x3d7   :  { %v591_v60 = vadd.f32 1.0, %v4046_v57  ;;  %4047 = vrcp.f32 %v700_v59 }
 0x3d9   :  { %4049 = vrcp.f32 %v591_v60 }
 0x3e1   :  { %v4048_v61 = vpop.eup %4047 }
 0x3e2   :  { %v716_v12 = vsub.f32 1.0, %v4048_v61  ;;  %v724_v15 = vmul.f32 %v4048_v61, %v722_v11 }
 0x3e3   :  { %v4050_v2 = vpop.eup %4049 }
 0x3e4   :  { %v607_v18 = vsub.f32 1.0, %v4050_v2  ;;  %v615_v22 = vmul.f32 %v4050_v2, %v613_v14 }
 0x43a   :  { %v707_v63 = vpop.permute.xlu0 %706 }
 0x43b   :  { %v709_v1 = vmul.f32 %v4048_v61, %v707_v63 }
 0x43c   :  { %v598_v3 = vpop.permute.xlu1 %597 }
 0x43d   :  { %v600_v4 = vmul.f32 %v4050_v2, %v598_v3  ;;  %711 = vrot.lane.b32.xlu0 %v709_v1, %s4147_s18 }
 0x43f   :  { %602 = vrot.lane.b32.xlu1 %v600_v4, %s4147_s18 }
 0x4af   :  { %v712_v5 = vpop.permute.xlu0 %711 }
 0x4b0   :  { %v714_v6 = vadd.f32 %v712_v5, %v4413_v62 }
 0x4b1   :  { %v603_v7 = vpop.permute.xlu1 %602 }
 0x4b2   :  { %4051 = vtanh.f32 %v714_v6  ;;  %v605_v8 = vadd.f32 %v603_v7, %v4416_v0 }
 0x4b4   :  { %4053 = vtanh.f32 %v605_v8 }
 0x4bc   :  { %v4052_v9 = vpop.eup %4051 }
 0x4bd   :  { %718 = vrot.lane.b32.xlu0 %v4052_v9, %s4148_s19 }
 0x4be   :  { %v4054_v10 = vpop.eup %4053 }
 0x4bf   :  { %609 = vrot.lane.b32.xlu1 %v4054_v10, %s4148_s19 }
 0x52f   :  { %v719_v13 = vpop.permute.xlu0 %718 }
 0x530   :  { %v721_v17 = vmul.f32 %v719_v13, %v716_v12 }
 0x531   :  { %v610_v19 = vpop.permute.xlu1 %609 }
 0x532   :  { %v4467_v20 = vadd.f32 %v724_v15, %v721_v17  ;;  %v612_v21 = vmul.f32 %v610_v19, %v607_v18 }
 0x534   :  { %v4469_v23 = vadd.f32 %v615_v22, %v612_v21  ;;  %v836_v24 = vrot.slane %v4467_v20, 4  ;;  %v940_v7 = vrot.slane %v4467_v20, 2 }
 0x536   :  { %837 = vrot.lane.b32.xlu0 %v836_v24, %s4148_s19  ;;  %v727_v25 = vrot.slane %v4469_v23, 2  ;;  %v831_v10 = vrot.slane %v4469_v23, 6 }
 0x538   :  { %728 = vrot.lane.b32.xlu1 %v727_v25, %s4148_s19 }
 0x5a8   :  { %v4475_v26 = vpop.permute.xlu0 %837 }
 0x5a9   :  { %3529 = vmatmul.mubr.msk.f32.vlgmr.msra.gmra.mrb[6].mxu1 %vm124_vm1, %v4475_v26 }
 0x5aa   :  { %v4479_v27 = vpop.permute.xlu1 %728  ;;  %3877 = vmatpush3.bf16.msra.mxu1 %v4341_v34  ;;  %3550 = vmatprep.mubr.msk.f32.mxu1 %vm4145_vm2, %v4146_v43 }
 0x5ab   :  { %3518 = vmatmul.mubr.msk.f32.vlgmr.msra.gmra.mrb[6].mxu0 %vm124_vm1, %v4479_v27  ;;  %3878 = vmatprep.subr.bf16.mxu1 %v4144_v16 }
 0x5ac   :  { %3871 = vmatpush3.bf16.msra.mxu0 %v4346_v36  ;;  %3539 = vmatprep.mubr.msk.f32.mxu0 %vm4145_vm2, %v4146_v43 }
 0x5ad   :  { %3872 = vmatprep.subr.bf16.mxu0 %v4144_v16 }
 0x5ae   :  { %3880 = vmatpush3.bf16.msra.mxu1 %v4360_v41 }
 0x5af   :  { %3887 = vmatprep.subr.bf16.mxu1 %v4144_v16 }
 0x5b0   :  { %3874 = vmatpush3.bf16.msra.mxu0 %v4363_v42 }
 0x5b1   :  { %3881 = vmatprep.subr.bf16.mxu0 %v4144_v16 }
 0x67c   :  { %v907_v28 = vpop.f32.mrb[6].mxu1 }
 0x67d   :  { %v921_v29 = vadd.f32 %v4402_v52, %v907_v28  ;;  %v3530_v30 = vpop.f32.mrb[7].mxu1  ;;  %v912_v40 = vrot.slane %v907_v28, 6 }
 0x67e   :  { %v798_v31 = vpop.f32.mrb[6].mxu0 }
 0x67f   :  { %v923_v35 = vrot.slane %v921_v29, 6  ;;  %v812_v37 = vadd.f32 %v4408_v58, %v798_v31  ;;  %v3519_v38 = vpop.f32.mrb[7].mxu0  ;;  %v803_v44 = vrot.slane %v798_v31, 4  ;;  %v914_v45 = vadd.f32 %v912_v40, %v4413_v62 }
 0x681   :  { %v814_v39 = vrot.slane %v812_v37, 4  ;;  %924 = vrot.lane.b32.xlu0 %v923_v35, %s4147_s18  ;;  %v805_v46 = vadd.f32 %v803_v44, %v4416_v0  ;;  %v3233_v47 = vmul.f32 -1.442695, %v914_v45 }
 0x683   :  { %815 = vrot.lane.b32.xlu1 %v814_v39, %s4147_s18  ;;  %v3231_v48 = vmul.f32 -1.442695, %v805_v46  ;;  %4055 = vpow2.f32 %v3233_v47 }
 0x685   :  { %4057 = vpow2.f32 %v3231_v48 }
 0x68d   :  { %v4056_v50 = vpop.eup %4055 }
 0x68e   :  { %v918_v54 = vadd.f32 1.0, %v4056_v50 }
 0x68f   :  { %v4058_v53 = vpop.eup %4057 }
 0x690   :  { %v809_v55 = vadd.f32 1.0, %v4058_v53  ;;  %4059 = vrcp.f32 %v918_v54 }
 0x692   :  { %4061 = vrcp.f32 %v809_v55 }
 0x69a   :  { %v4060_v56 = vpop.eup %4059 }
 0x69b   :  { %v934_v8 = vsub.f32 1.0, %v4060_v56  ;;  %v942_v11 = vmul.f32 %v4060_v56, %v940_v7 }
 0x69c   :  { %v4062_v60 = vpop.eup %4061 }
 0x69d   :  { %v825_v13 = vsub.f32 1.0, %v4062_v60  ;;  %v833_v17 = vmul.f32 %v4062_v60, %v831_v10 }
 0x6f3   :  { %v925_v57 = vpop.permute.xlu0 %924 }
 0x6f4   :  { %v927_v59 = vmul.f32 %v4060_v56, %v925_v57 }
 0x6f5   :  { %v816_v61 = vpop.permute.xlu1 %815 }
 0x6f6   :  { %v818_v63 = vmul.f32 %v4062_v60, %v816_v61  ;;  %929 = vrot.lane.b32.xlu0 %v927_v59, %s4147_s18 }
 0x6f8   :  { %820 = vrot.lane.b32.xlu1 %v818_v63, %s4147_s18 }
 0x768   :  { %v930_v1 = vpop.permute.xlu0 %929 }
 0x769   :  { %v932_v2 = vadd.f32 %v930_v1, %v4413_v62 }
 0x76a   :  { %v821_v3 = vpop.permute.xlu1 %820 }
 0x76b   :  { %4063 = vtanh.f32 %v932_v2  ;;  %v823_v4 = vadd.f32 %v821_v3, %v4416_v0 }
 0x76d   :  { %4065 = vtanh.f32 %v823_v4 }
 0x775   :  { %v4064_v5 = vpop.eup %4063 }
 0x776   :  { %936 = vrot.lane.b32.xlu0 %v4064_v5, %s4148_s19 }
 0x777   :  { %v4066_v6 = vpop.eup %4065 }
 0x778   :  { %827 = vrot.lane.b32.xlu1 %v4066_v6, %s4148_s19 }
 0x7e8   :  { %v937_v9 = vpop.permute.xlu0 %936 }
 0x7e9   :  { %v939_v12 = vmul.f32 %v937_v9, %v934_v8 }
 0x7ea   :  { %v828_v14 = vpop.permute.xlu1 %827 }
 0x7eb   :  { %v4509_v15 = vadd.f32 %v942_v11, %v939_v12  ;;  %v830_v18 = vmul.f32 %v828_v14, %v825_v13 }
 0x7ed   :  { %v1054_v19 = vrot.slane %v4509_v15, 2  ;;  %v4512_v21 = vadd.f32 %v833_v17, %v830_v18 }
 0x7ef   :  { %1055 = vrot.lane.b32.xlu0 %v1054_v19, %s4148_s19  ;;  %v945_v20 = vrot.slane %v4512_v21, 4  ;;  %v1049_v7 = vrot.slane %v4512_v21, 6 }
 0x7f1   :  { %946 = vrot.lane.b32.xlu1 %v945_v20, %s4148_s19 }
 0x861   :  { %v4517_v22 = vpop.permute.xlu0 %1055 }
 0x862   :  { %3551 = vmatmul.mubr.msk.f32.vlgmr.msra.gmra.mrb[8].mxu1 %vm124_vm1, %v4517_v22 }
 0x863   :  { %v4521_v23 = vpop.permute.xlu1 %946  ;;  %3889 = vmatpush3.bf16.msra.mxu1 %v4341_v34  ;;  %3572 = vmatprep.mubr.msk.f32.mxu1 %vm4145_vm2, %v4146_v43 }
 0x864   :  { %3540 = vmatmul.mubr.msk.f32.vlgmr.msra.gmra.mrb[8].mxu0 %vm124_vm1, %v4521_v23  ;;  %3890 = vmatprep.subr.bf16.mxu1 %v4144_v16 }
 0x865   :  { %3883 = vmatpush3.bf16.msra.mxu0 %v4346_v36  ;;  %3561 = vmatprep.mubr.msk.f32.mxu0 %vm4145_vm2, %v4146_v43 }
 0x866   :  { %3884 = vmatprep.subr.bf16.mxu0 %v4144_v16 }
 0x867   :  { %3892 = vmatpush3.bf16.msra.mxu1 %v4360_v41 }
 0x868   :  { %3899 = vmatprep.subr.bf16.mxu1 %v4144_v16 }
 0x869   :  { %3886 = vmatpush3.bf16.msra.mxu0 %v4363_v42 }
 0x86a   :  { %3893 = vmatprep.subr.bf16.mxu0 %v4144_v16 }
 0x935   :  { %v1125_v24 = vpop.f32.mrb[8].mxu1 }
 0x936   :  { %v1136_v25 = vadd.f32 %v4402_v52, %v1125_v24  ;;  %v3552_v28 = vpop.f32.mrb[9].mxu1  ;;  %v1129_v37 = vadd.f32 %v1125_v24, %v4413_v62 }
 0x937   :  { %v1016_v29 = vpop.f32.mrb[8].mxu0 }
 0x938   :  { %v1030_v30 = vadd.f32 %v4408_v58, %v1016_v29  ;;  %1138 = vrot.lane.b32.xlu0 %v1136_v25, %s4147_s18  ;;  %v3541_v31 = vpop.f32.mrb[9].mxu0  ;;  %v1021_v38 = vrot.slane %v1016_v29, 2  ;;  %v3237_v39 = vmul.f32 -1.442695, %v1129_v37 }
 0x93a   :  { %v1032_v35 = vrot.slane %v1030_v30, 2  ;;  %v1023_v40 = vadd.f32 %v1021_v38, %v4416_v0  ;;  %4067 = vpow2.f32 %v3237_v39 }
 0x93c   :  { %1033 = vrot.lane.b32.xlu1 %v1032_v35, %s4147_s18  ;;  %v3235_v44 = vmul.f32 -1.442695, %v1023_v40 }
 0x93e   :  { %4069 = vpow2.f32 %v3235_v44 }
 0x944   :  { %v4068_v45 = vpop.eup %4067 }
 0x945   :  { %v1133_v46 = vadd.f32 1.0, %v4068_v45 }
 0x947   :  { %4071 = vrcp.f32 %v1133_v46 }
 0x948   :  { %v4070_v47 = vpop.eup %4069 }
 0x949   :  { %v1027_v48 = vadd.f32 1.0, %v4070_v47 }
 0x94b   :  { %4073 = vrcp.f32 %v1027_v48 }
 0x951   :  { %v4072_v50 = vpop.eup %4071 }
 0x952   :  { %v1148_v3 = vsub.f32 1.0, %v4072_v50  ;;  %v1155_v5 = vmul.f32 %v4072_v50, %v1054_v19 }
 0x955   :  { %v4074_v55 = vpop.eup %4073 }
 0x956   :  { %v1051_v10 = vmul.f32 %v4074_v55, %v1049_v7 }
 0x9aa   :  { %v1139_v53 = vpop.permute.xlu0 %1138 }
 0x9ab   :  { %v1141_v54 = vmul.f32 %v4072_v50, %v1139_v53 }
 0x9ad   :  { %1143 = vrot.lane.b32.xlu0 %v1141_v54, %s4147_s18 }
 0x9ae   :  { %v1034_v56 = vpop.permute.xlu1 %1033 }
 0x9af   :  { %v1036_v57 = vmul.f32 %v4074_v55, %v1034_v56 }
 0x9b1   :  { %1038 = vrot.lane.b32.xlu1 %v1036_v57, %s4147_s18 }
 0xa1f   :  { %v1144_v59 = vpop.permute.xlu0 %1143 }
 0xa20   :  { %v1146_v60 = vadd.f32 %v1144_v59, %v4413_v62  ;;  %v1043_v62 = vsub.f32 1.0, %v4074_v55 }
 0xa22   :  { %4075 = vtanh.f32 %v1146_v60 }
 0xa23   :  { %v1039_v61 = vpop.permute.xlu1 %1038 }
 0xa24   :  { %v1041_v63 = vadd.f32 %v1039_v61, %v4416_v0 }
 0xa26   :  { %4077 = vtanh.f32 %v1041_v63 }
 0xa2c   :  { %v4076_v1 = vpop.eup %4075 }
 0xa2d   :  { %1150 = vrot.lane.b32.xlu0 %v4076_v1, %s4148_s19 }
 0xa30   :  { %v4078_v2 = vpop.eup %4077 }
 0xa31   :  { %1045 = vrot.lane.b32.xlu1 %v4078_v2, %s4148_s19 }
 0xa9f   :  { %v1151_v4 = vpop.permute.xlu0 %1150 }
 0xaa0   :  { %v1153_v6 = vmul.f32 %v1151_v4, %v1148_v3 }
 0xaa2   :  { %v4550_v8 = vadd.f32 %v1155_v5, %v1153_v6 }
 0xaa3   :  { %v1046_v9 = vpop.permute.xlu1 %1045 }
 0xaa4   :  { %v1048_v11 = vmul.f32 %v1046_v9, %v1043_v62  ;;  %1262 = vrot.lane.b32.xlu0 %v4550_v8, %s4148_s19  ;;  %v1365_v59 = vrot.slane %v4550_v8, 2 }
 0xaa6   :  { %v4554_v0 = vadd.f32 %v1051_v10, %v1048_v11 }
 0xaa8   :  { %v1158_v12 = vrot.slane %v4554_v0, 6 }
 0xaaa   :  { %1159 = vrot.lane.b32.xlu1 %v1158_v12, %s4148_s19 }
 0xb16   :  { %v4560_v13 = vpop.permute.xlu0 %1262 }
 0xb17   :  { %3573 = vmatmul.mubr.msk.f32.vlgmr.msra.gmra.mrb[10].mxu1 %vm124_vm1, %v4560_v13 }
 0xb18   :  { %3901 = vmatpush3.bf16.msra.mxu1 %v4341_v34  ;;  %3594 = vmatprep.mubr.msk.f32.mxu1 %vm4145_vm2, %v4146_v43 }
 0xb19   :  { %3902 = vmatprep.subr.bf16.mxu1 %v4144_v16 }
 0xb1c   :  { %v4568_v14 = vpop.permute.xlu1 %1159  ;;  %3904 = vmatpush3.bf16.msra.mxu1 %v4360_v41 }
 0xb1d   :  { %3562 = vmatmul.mubr.msk.f32.vlgmr.msra.gmra.mrb[10].mxu0 %vm124_vm1, %v4568_v14  ;;  %3911 = vmatprep.subr.bf16.mxu1 %v4144_v16 }
 0xb1e   :  { %3895 = vmatpush3.bf16.msra.mxu0 %v4346_v36  ;;  %3583 = vmatprep.mubr.msk.f32.mxu0 %vm4145_vm2, %v4146_v43 }
 0xb1f   :  { %3896 = vmatprep.subr.bf16.mxu0 %v4144_v16 }
 0xb22   :  { %3898 = vmatpush3.bf16.msra.mxu0 %v4363_v42 }
 0xb23   :  { %3905 = vmatprep.subr.bf16.mxu0 %v4144_v16 }
 0xbea   :  { %v1332_v15 = vpop.f32.mrb[10].mxu1 }
 0xbeb   :  { %v1346_v17 = vadd.f32 %v4402_v52, %v1332_v15  ;;  %v3574_v18 = vpop.f32.mrb[11].mxu1  ;;  %v1337_v25 = vrot.slane %v1332_v15, 2 }
 0xbed   :  { %v1348_v19 = vrot.slane %v1346_v17, 2  ;;  %v1339_v28 = vadd.f32 %v1337_v25, %v4397_v51 }
 0xbef   :  { %1349 = vrot.lane.b32.xlu0 %v1348_v19, %s4147_s18  ;;  %v3241_v29 = vmul.f32 -1.442695, %v1339_v28 }
 0xbf0   :  { %v1229_v21 = vpop.f32.mrb[10].mxu0 }
 0xbf1   :  { %v1240_v20 = vadd.f32 %v4408_v58, %v1229_v21  ;;  %v3563_v24 = vpop.f32.mrb[11].mxu0  ;;  %v1233_v30 = vadd.f32 %v1229_v21, %v4395_v49  ;;  %4079 = vpow2.f32 %v3241_v29 }
 0xbf3   :  { %1242 = vrot.lane.b32.xlu1 %v1240_v20, %s4147_s18  ;;  %v3239_v31 = vmul.f32 -1.442695, %v1233_v30 }
 0xbf5   :  { %4081 = vpow2.f32 %v3239_v31 }
 0xbfb   :  { %v4080_v35 = vpop.eup %4079 }
 0xbfc   :  { %v1343_v37 = vadd.f32 1.0, %v4080_v35 }
 0xbfe   :  { %4083 = vrcp.f32 %v1343_v37 }
 0xbff   :  { %v4082_v38 = vpop.eup %4081 }
 0xc00   :  { %v1237_v39 = vadd.f32 1.0, %v4082_v38 }
 0xc02   :  { %4085 = vrcp.f32 %v1237_v39 }
 0xc08   :  { %v4084_v40 = vpop.eup %4083 }
 0xc09   :  { %v1359_v60 = vsub.f32 1.0, %v4084_v40  ;;  %v1367_v63 = vmul.f32 %v4084_v40, %v1365_v59 }
 0xc0c   :  { %v4086_v46 = vpop.eup %4085 }
 0xc0d   :  { %v1252_v3 = vsub.f32 1.0, %v4086_v46  ;;  %v1259_v5 = vmul.f32 %v4086_v46, %v1158_v12 }
 0xc61   :  { %v1350_v44 = vpop.permute.xlu0 %1349 }
 0xc62   :  { %v1352_v45 = vmul.f32 %v4084_v40, %v1350_v44 }
 0xc64   :  { %1354 = vrot.lane.b32.xlu0 %v1352_v45, %s4147_s18 }
 0xc65   :  { %v1243_v47 = vpop.permute.xlu1 %1242 }
 0xc66   :  { %v1245_v48 = vmul.f32 %v4086_v46, %v1243_v47 }
 0xc68   :  { %1247 = vrot.lane.b32.xlu1 %v1245_v48, %s4147_s18 }
 0xcd6   :  { %v1355_v50 = vpop.permute.xlu0 %1354 }
 0xcd7   :  { %v1357_v53 = vadd.f32 %v1355_v50, %v4397_v51 }
 0xcd9   :  { %4087 = vtanh.f32 %v1357_v53 }
 0xcda   :  { %v1248_v54 = vpop.permute.xlu1 %1247 }
 0xcdb   :  { %v1250_v55 = vadd.f32 %v1248_v54, %v4395_v49 }
 0xcdd   :  { %4089 = vtanh.f32 %v1250_v55 }
 0xce3   :  { %v4088_v56 = vpop.eup %4087 }
 0xce4   :  { %1361 = vrot.lane.b32.xlu0 %v4088_v56, %s4148_s19 }
 0xce7   :  { %v4090_v57 = vpop.eup %4089 }
 0xce8   :  { %1254 = vrot.lane.b32.xlu1 %v4090_v57, %s4148_s19 }
 0xd56   :  { %v1362_v61 = vpop.permute.xlu0 %1361 }
 0xd57   :  { %v1364_v1 = vmul.f32 %v1362_v61, %v1359_v60 }
 0xd59   :  { %v4593_v2 = vadd.f32 %v1367_v63, %v1364_v1 }
 0xd5a   :  { %v1255_v4 = vpop.permute.xlu1 %1254 }
 0xd5b   :  { %v1257_v6 = vmul.f32 %v1255_v4, %v1252_v3  ;;  %v1478_v7 = vrot.slane %v4593_v2, 6  ;;  %v1582_v56 = vrot.slane %v4593_v2, 2 }
 0xd5d   :  { %v4598_v62 = vadd.f32 %v1259_v5, %v1257_v6  ;;  %1479 = vrot.lane.b32.xlu0 %v1478_v7, %s4148_s19 }
 0xd5f   :  { %1370 = vrot.lane.b32.xlu1 %v4598_v62, %s4148_s19  ;;  %v1473_v60 = vrot.slane %v4598_v62, 6 }
 0xdcf   :  { %v4603_v8 = vpop.permute.xlu0 %1479 }
 0xdd0   :  { %3595 = vmatmul.mubr.msk.f32.vlgmr.msra.gmra.mrb[12].mxu1 %vm124_vm1, %v4603_v8 }
 0xdd1   :  { %v4607_v9 = vpop.permute.xlu1 %1370  ;;  %3913 = vmatpush3.bf16.msra.mxu1 %v4341_v34  ;;  %3616 = vmatprep.mubr.msk.f32.mxu1 %vm4145_vm2, %v4146_v43 }
 0xdd2   :  { %3584 = vmatmul.mubr.msk.f32.vlgmr.msra.gmra.mrb[12].mxu0 %vm124_vm1, %v4607_v9  ;;  %3914 = vmatprep.subr.bf16.mxu1 %v4144_v16 }
 0xdd3   :  { %3907 = vmatpush3.bf16.msra.mxu0 %v4346_v36  ;;  %3605 = vmatprep.mubr.msk.f32.mxu0 %vm4145_vm2, %v4146_v43 }
 0xdd4   :  { %3908 = vmatprep.subr.bf16.mxu0 %v4144_v16 }
 0xdd5   :  { %3916 = vmatpush3.bf16.msra.mxu1 %v4360_v41 }
 0xdd6   :  { %3923 = vmatprep.subr.bf16.mxu1 %v4144_v16 }
 0xdd7   :  { %3910 = vmatpush3.bf16.msra.mxu0 %v4363_v42 }
 0xdd8   :  { %3917 = vmatprep.subr.bf16.mxu0 %v4144_v16 }
 0xea3   :  { %v1549_v10 = vpop.f32.mrb[12].mxu1 }
 0xea4   :  { %v1563_v11 = vadd.f32 %v4402_v52, %v1549_v10  ;;  %v3596_v0 = vpop.f32.mrb[13].mxu1  ;;  %v1554_v21 = vrot.slane %v1549_v10, 4 }
 0xea5   :  { %v1440_v12 = vpop.f32.mrb[12].mxu0 }
 0xea6   :  { %v1565_v15 = vrot.slane %v1563_v11, 4  ;;  %v1454_v17 = vadd.f32 %v4408_v58, %v1440_v12  ;;  %v3585_v18 = vpop.f32.mrb[13].mxu0  ;;  %v1445_v20 = vrot.slane %v1440_v12, 6  ;;  %v1556_v24 = vadd.f32 %v1554_v21, %v4397_v51 }
 0xea8   :  { %v1456_v19 = vrot.slane %v1454_v17, 6  ;;  %1566 = vrot.lane.b32.xlu0 %v1565_v15, %s4147_s18  ;;  %v1447_v25 = vadd.f32 %v1445_v20, %v4395_v49  ;;  %v3245_v28 = vmul.f32 -1.442695, %v1556_v24 }
 0xeaa   :  { %1457 = vrot.lane.b32.xlu1 %v1456_v19, %s4147_s18  ;;  %v3243_v29 = vmul.f32 -1.442695, %v1447_v25  ;;  %4091 = vpow2.f32 %v3245_v28 }
 0xeac   :  { %4093 = vpow2.f32 %v3243_v29 }
 0xeb4   :  { %v4092_v30 = vpop.eup %4091 }
 0xeb5   :  { %v1560_v35 = vadd.f32 1.0, %v4092_v30 }
 0xeb6   :  { %v4094_v31 = vpop.eup %4093 }
 0xeb7   :  { %v1451_v37 = vadd.f32 1.0, %v4094_v31  ;;  %4095 = vrcp.f32 %v1560_v35 }
 0xeb9   :  { %4097 = vrcp.f32 %v1451_v37 }
 0xec1   :  { %v4096_v38 = vpop.eup %4095 }
 0xec2   :  { %v1576_v57 = vsub.f32 1.0, %v4096_v38  ;;  %v1584_v61 = vmul.f32 %v4096_v38, %v1582_v56 }
 0xec3   :  { %v4098_v44 = vpop.eup %4097 }
 0xec4   :  { %v1467_v1 = vsub.f32 1.0, %v4098_v44  ;;  %v1475_v5 = vmul.f32 %v4098_v44, %v1473_v60 }
 0xf1a   :  { %v1567_v39 = vpop.permute.xlu0 %1566 }
 0xf1b   :  { %v1569_v40 = vmul.f32 %v4096_v38, %v1567_v39 }
 0xf1c   :  { %v1458_v45 = vpop.permute.xlu1 %1457 }
 0xf1d   :  { %v1460_v46 = vmul.f32 %v4098_v44, %v1458_v45  ;;  %1571 = vrot.lane.b32.xlu0 %v1569_v40, %s4147_s18 }
 0xf1f   :  { %1462 = vrot.lane.b32.xlu1 %v1460_v46, %s4147_s18 }
 0xf8f   :  { %v1572_v47 = vpop.permute.xlu0 %1571 }
 0xf90   :  { %v1574_v48 = vadd.f32 %v1572_v47, %v4397_v51 }
 0xf91   :  { %v1463_v50 = vpop.permute.xlu1 %1462 }
 0xf92   :  { %4099 = vtanh.f32 %v1574_v48  ;;  %v1465_v53 = vadd.f32 %v1463_v50, %v4395_v49 }
 0xf94   :  { %4101 = vtanh.f32 %v1465_v53 }
 0xf9c   :  { %v4100_v54 = vpop.eup %4099 }
 0xf9d   :  { %1578 = vrot.lane.b32.xlu0 %v4100_v54, %s4148_s19 }
 0xf9e   :  { %v4102_v55 = vpop.eup %4101 }
 0xf9f   :  { %1469 = vrot.lane.b32.xlu1 %v4102_v55, %s4148_s19 }
0x100f   :  { %v1579_v59 = vpop.permute.xlu0 %1578 }
0x1010   :  { %v1581_v63 = vmul.f32 %v1579_v59, %v1576_v57 }
0x1011   :  { %v1470_v3 = vpop.permute.xlu1 %1469 }
0x1012   :  { %v4637_v4 = vadd.f32 %v1584_v61, %v1581_v63  ;;  %v1472_v6 = vmul.f32 %v1470_v3, %v1467_v1 }
0x1014   :  { %v4639_v7 = vadd.f32 %v1475_v5, %v1472_v6  ;;  %v1696_v10 = vrot.slane %v4637_v4, 4  ;;  %v1800_v50 = vrot.slane %v4637_v4, 2  ;;  %v2017_v6 = vld [vmem:[%s4904_s8] sm:$0xff] }
0x1016   :  { %1697 = vrot.lane.b32.xlu0 %v1696_v10, %s4148_s19  ;;  %v1587_v2 = vrot.slane %v4639_v7, 2  ;;  %v1691_v55 = vrot.slane %v4639_v7, 6  ;;  %v2018_v7 = vld [vmem:[%s4904_s8 + $0x8] sm:$0xff] }
0x1017   :  { %v3936_v10 = vpack.c.bf16 %v2018_v7, %v2017_v6  ;;  %v2022_v6 = vld [vmem:[%s4904_s8 + $0x28] sm:$0xff]  ;;  %v2023_v7 = vld [vmem:[%s4904_s8 + $0x30] sm:$0xff] }
0x1018   :  { %1588 = vrot.lane.b32.xlu1 %v1587_v2, %s4148_s19  ;;  %v2019_v2 = vld [vmem:[%s4904_s8 + $0x10] sm:$0xff] }
0x1088   :  { %v4645_v11 = vpop.permute.xlu0 %1697 }
0x1089   :  { %3617 = vmatmul.mubr.msk.f32.vlgmr.msra.gmra.mrb[14].mxu1 %vm124_vm1, %v4645_v11 }
0x108a   :  { %v4649_v62 = vpop.permute.xlu1 %1588  ;;  %3925 = vmatpush3.bf16.msra.mxu1 %v4341_v34  ;;  %3638 = vmatprep.mubr.msk.f32.mxu1 %vm4145_vm2, %v4146_v43 }
0x108b   :  { %3606 = vmatmul.mubr.msk.f32.vlgmr.msra.gmra.mrb[14].mxu0 %vm124_vm1, %v4649_v62  ;;  %3926 = vmatprep.subr.bf16.mxu1 %v4144_v16 }
0x108c   :  { %3919 = vmatpush3.bf16.msra.mxu0 %v4346_v36  ;;  %3627 = vmatprep.mubr.msk.f32.mxu0 %vm4145_vm2, %v4146_v43 }
0x108d   :  { %3920 = vmatprep.subr.bf16.mxu0 %v4144_v16 }
0x108e   :  { %3928 = vmatpush3.bf16.msra.mxu1 %v4360_v41 }
0x108f   :  { %3935 = vmatprep.subr.bf16.mxu1 %v4144_v16 }
0x1090   :  { %3922 = vmatpush3.bf16.msra.mxu0 %v4363_v42 }
0x1091   :  { %3929 = vmatprep.subr.bf16.mxu0 %v4144_v16 }
0x115c   :  { %v1767_v34 = vpop.f32.mrb[14].mxu1 }
0x115d   :  { %v1781_v0 = vadd.f32 %v4402_v52, %v1767_v34  ;;  %v3618_v12 = vpop.f32.mrb[15].mxu1  ;;  %v1772_v41 = vrot.slane %v1767_v34, 6  ;;  %v2020_v34 = vld [vmem:[%s4904_s8 + $0x18] sm:$0xff] }
0x115e   :  { %v1658_v15 = vpop.f32.mrb[14].mxu0 }
0x115f   :  { %v1783_v17 = vrot.slane %v1781_v0, 6  ;;  %v1672_v36 = vadd.f32 %v4408_v58, %v1658_v15  ;;  %v3607_v18 = vpop.f32.mrb[15].mxu0  ;;  %v1663_v21 = vrot.slane %v1658_v15, 4  ;;  %v1774_v42 = vadd.f32 %v1772_v41, %v4397_v51 }
0x1160   :  { %v3939_v15 = vpack.c.bf16 %v2020_v34, %v2019_v2 }
0x1161   :  { %v1674_v19 = vrot.slane %v1672_v36, 4  ;;  %1784 = vrot.lane.b32.xlu0 %v1783_v17, %s4147_s18  ;;  %v1665_v20 = vadd.f32 %v1663_v21, %v4395_v49  ;;  %v3249_v24 = vmul.f32 -1.442695, %v1774_v42 }
0x1163   :  { %1675 = vrot.lane.b32.xlu1 %v1674_v19, %s4147_s18  ;;  %v3247_v25 = vmul.f32 -1.442695, %v1665_v20  ;;  %4103 = vpow2.f32 %v3249_v24 }
0x1165   :  { %4105 = vpow2.f32 %v3247_v25 }
0x116d   :  { %v4104_v52 = vpop.eup %4103 }
0x116e   :  { %v1778_v29 = vadd.f32 1.0, %v4104_v52 }
0x116f   :  { %v4106_v28 = vpop.eup %4105 }
0x1170   :  { %v1669_v58 = vadd.f32 1.0, %v4106_v28  ;;  %4107 = vrcp.f32 %v1778_v29 }
0x1172   :  { %4109 = vrcp.f32 %v1669_v58 }
0x117a   :  { %v4108_v30 = vpop.eup %4107 }
0x117b   :  { %v1794_v53 = vsub.f32 1.0, %v4108_v30  ;;  %v1802_v56 = vmul.f32 %v4108_v30, %v1800_v50 }
0x117c   :  { %v4110_v37 = vpop.eup %4109 }
0x117d   :  { %v1685_v59 = vsub.f32 1.0, %v4110_v37  ;;  %v1693_v63 = vmul.f32 %v4110_v37, %v1691_v55 }
0x11d3   :  { %v1785_v31 = vpop.permute.xlu0 %1784 }
0x11d4   :  { %v1787_v35 = vmul.f32 %v4108_v30, %v1785_v31 }
0x11d5   :  { %v1676_v38 = vpop.permute.xlu1 %1675 }
0x11d6   :  { %v1678_v39 = vmul.f32 %v4110_v37, %v1676_v38  ;;  %1789 = vrot.lane.b32.xlu0 %v1787_v35, %s4147_s18 }
0x11d8   :  { %1680 = vrot.lane.b32.xlu1 %v1678_v39, %s4147_s18 }
0x1248   :  { %v1790_v40 = vpop.permute.xlu0 %1789 }
0x1249   :  { %v1792_v44 = vadd.f32 %v1790_v40, %v4397_v51 }
0x124a   :  { %v1681_v45 = vpop.permute.xlu1 %1680 }
0x124b   :  { %4111 = vtanh.f32 %v1792_v44  ;;  %v1683_v46 = vadd.f32 %v1681_v45, %v4395_v49 }
0x124d   :  { %4113 = vtanh.f32 %v1683_v46 }
0x1255   :  { %v4112_v47 = vpop.eup %4111 }
0x1256   :  { %1796 = vrot.lane.b32.xlu0 %v4112_v47, %s4148_s19 }
0x1257   :  { %v4114_v48 = vpop.eup %4113 }
0x1258   :  { %1687 = vrot.lane.b32.xlu1 %v4114_v48, %s4148_s19 }
0x12c8   :  { %v1797_v54 = vpop.permute.xlu0 %1796 }
0x12c9   :  { %v1799_v57 = vmul.f32 %v1797_v54, %v1794_v53 }
0x12ca   :  { %v1688_v60 = vpop.permute.xlu1 %1687 }
0x12cb   :  { %v4679_v61 = vadd.f32 %v1802_v56, %v1799_v57  ;;  %v1690_v1 = vmul.f32 %v1688_v60, %v1685_v59 }
0x12cd   :  { %v1914_v3 = vrot.slane %v4679_v61, 2  ;;  %v4682_v5 = vadd.f32 %v1693_v63, %v1690_v1 }
0x12cf   :  { %1915 = vrot.lane.b32.xlu0 %v1914_v3, %s4148_s19  ;;  %v1805_v4 = vrot.slane %v4682_v5, 4 }
0x12d1   :  { %1806 = vrot.lane.b32.xlu1 %v1805_v4, %s4148_s19  ;;  %v2021_v4 = vld [vmem:[%s4904_s8 + $0x20] sm:$0xff] }
0x1341   :  { %v4701_v0 = vpop.permute.xlu0 %1915 }
0x1342   :  { %3639 = vmatmul.mubr.msk.f32.vlgmr.msra.gmra.mrb[16].mxu1 %vm124_vm1, %v4701_v0 }
0x1343   :  { %3937 = vmatpush3.bf16.msra.mxu1 %v3936_v10  ;;  %v1807_v12 = vpop.permute.xlu1 %1806  ;;  %3660 = vmatprep.mubr.msk.f32.mxu1 %vm4145_vm2, %v4146_v43 }
0x1344   :  { %3628 = vmatmul.mubr.msk.f32.vlgmr.msra.gmra.mrb[16].mxu0 %vm124_vm1, %v1807_v12  ;;  %3938 = vmatprep.subr.bf16.mxu1 %v4144_v16 }
0x1345   :  { %3649 = vmatprep.mubr.msk.f32.mxu0 %vm4145_vm2, %v4146_v43 }
0x1347   :  { %3940 = vmatpush3.bf16.msra.mxu1 %v3939_v15 }
0x1348   :  { %3947 = vmatprep.subr.bf16.mxu1 %v4144_v16 }
0x134a   :  { %3661 = vmatmul.mubr.msk.f32.vlgmr.msra.gmra.mrb[18].mxu1 %vm124_vm1, %v4437_v33 }
0x134b   :  { %3949 = vmatpush3.bf16.msra.mxu1 %v3936_v10  ;;  %3682 = vmatprep.mubr.msk.f32.mxu1 %vm4145_vm2, %v4146_v43 }
0x134c   :  { %3950 = vmatprep.subr.bf16.mxu1 %v4144_v16 }
0x134f   :  { %3952 = vmatpush3.bf16.msra.mxu1 %v3939_v15 }
0x1350   :  { %3959 = vmatprep.subr.bf16.mxu1 %v4144_v16 }
0x1352   :  { %3683 = vmatmul.mubr.msk.f32.vlgmr.msra.gmra.mrb[20].mxu1 %vm124_vm1, %v4479_v27  ;;  %v4127_v27 = vld [vmem:[%s4903_s7 + $0x1] ss:$0 sm:$0xff] }
0x1353   :  { %3961 = vmatpush3.bf16.msra.mxu1 %v3936_v10  ;;  %3704 = vmatprep.mubr.msk.f32.mxu1 %vm4145_vm2, %v4146_v43 }
0x1354   :  { %3962 = vmatprep.subr.bf16.mxu1 %v4144_v16 }
0x1357   :  { %3964 = vmatpush3.bf16.msra.mxu1 %v3939_v15 }
0x1358   :  { %3971 = vmatprep.subr.bf16.mxu1 %v4144_v16 }
0x135a   :  { %3705 = vmatmul.mubr.msk.f32.vlgmr.msra.gmra.mrb[22].mxu1 %vm124_vm1, %v4521_v23 }
0x135b   :  { %3973 = vmatpush3.bf16.msra.mxu1 %v3936_v10  ;;  %3726 = vmatprep.mubr.msk.f32.mxu1 %vm4145_vm2, %v4146_v43 }
0x135c   :  { %3974 = vmatprep.subr.bf16.mxu1 %v4144_v16 }
0x135f   :  { %3976 = vmatpush3.bf16.msra.mxu1 %v3939_v15 }
0x1360   :  { %3983 = vmatprep.subr.bf16.mxu1 %v4144_v16 }
0x1362   :  { %3727 = vmatmul.mubr.msk.f32.vlgmr.msra.gmra.mrb[24].mxu1 %vm124_vm1, %v4568_v14 }
0x1363   :  { %3985 = vmatpush3.bf16.msra.mxu1 %v3936_v10  ;;  %3748 = vmatprep.mubr.msk.f32.mxu1 %vm4145_vm2, %v4146_v43 }
0x1364   :  { %3986 = vmatprep.subr.bf16.mxu1 %v4144_v16 }
0x1367   :  { %3988 = vmatpush3.bf16.msra.mxu1 %v3939_v15 }
0x1368   :  { %3995 = vmatprep.subr.bf16.mxu1 %v4144_v16 }
0x136a   :  { %3749 = vmatmul.mubr.msk.f32.vlgmr.msra.gmra.mrb[26].mxu1 %vm124_vm1, %v4607_v9 }
0x136b   :  { %3997 = vmatpush3.bf16.msra.mxu1 %v3936_v10  ;;  %3770 = vmatprep.mubr.msk.f32.mxu1 %vm4145_vm2, %v4146_v43 }
0x136c   :  { %3998 = vmatprep.subr.bf16.mxu1 %v4144_v16 }
0x136f   :  { %4000 = vmatpush3.bf16.msra.mxu1 %v3939_v15 }
0x1370   :  { %4007 = vmatprep.subr.bf16.mxu1 %v4144_v16 }
0x1372   :  { %3771 = vmatmul.mubr.msk.f32.vlgmr.msra.gmra.mrb[28].mxu1 %vm124_vm1, %v4649_v62  ;;  %v4128_v62 = vld [vmem:[%s4900_s4 + $0x1] ss:$0 sm:$0xff] }
0x1373   :  { %4009 = vmatpush3.bf16.msra.mxu1 %v3936_v10  ;;  %3792 = vmatprep.mubr.msk.f32.mxu1 %vm4145_vm2, %v4146_v43 }
0x1374   :  { %4010 = vmatprep.subr.bf16.mxu1 %v4144_v16 }
0x1377   :  { %4012 = vmatpush3.bf16.msra.mxu1 %v3939_v15 }
0x1378   :  { %4019 = vmatprep.subr.bf16.mxu1 %v4144_v16 }
0x137a   :  { %3793 = vmatmul.mubr.msk.f32.vlgmr.msra.gmra.mrb[30].mxu1 %vm124_vm1, %v1807_v12 }
0x137b   :  { %4021 = vmatpush3.bf16.msra.mxu1 %v3936_v10  ;;  %3814 = vmatprep.mubr.msk.f32.mxu1 %vm4145_vm2, %v4146_v43  ;;  %v4789_v10 = vpack.c.bf16 %v2022_v6, %v2021_v4 }
0x137c   :  { %4022 = vmatprep.subr.bf16.mxu1 %v4144_v16 }
0x137d   :  { %3931 = vmatpush3.bf16.msra.mxu0 %v4789_v10 }
0x137e   :  { %3932 = vmatprep.subr.bf16.mxu0 %v4144_v16 }
0x137f   :  { %4024 = vmatpush3.bf16.msra.mxu1 %v3939_v15 }
0x1415   :  { %v1985_v33 = vpop.f32.mrb[16].mxu1 }
0x1416   :  { %v1996_v23 = vadd.f32 %v4127_v27, %v1985_v33  ;;  %v3640_v14 = vpop.f32.mrb[17].mxu1  ;;  %v1989_v37 = vadd.f32 %v1985_v33, %v4397_v51 }
0x1417   :  { %v1876_v9 = vpop.f32.mrb[16].mxu0 }
0x1418   :  { %v1890_v17 = vadd.f32 %v4128_v62, %v1876_v9  ;;  %1998 = vrot.lane.b32.xlu0 %v1996_v23, %s4147_s18  ;;  %v3629_v36 = vpop.f32.mrb[17].mxu0  ;;  %v1881_v38 = vrot.slane %v1876_v9, 2  ;;  %v3253_v39 = vmul.f32 -1.442695, %v1989_v37  ;;  %v1909_v23 = vrot.slane %v4682_v5, 6 }
0x141a   :  { %v1892_v18 = vrot.slane %v1890_v17, 2  ;;  %v1883_v40 = vadd.f32 %v1881_v38, %v4395_v49  ;;  %4115 = vpow2.f32 %v3253_v39 }
0x141c   :  { %1893 = vrot.lane.b32.xlu1 %v1892_v18, %s4147_s18  ;;  %v3251_v44 = vmul.f32 -1.442695, %v1883_v40 }
0x141d   :  { %v4760_v19 = vpop.f32.mrb[18].mxu1 }
0x141e   :  { %v3662_v41 = vpop.f32.mrb[19].mxu1  ;;  %4117 = vpow2.f32 %v3251_v44 }
0x1424   :  { %v4116_v45 = vpop.eup %4115 }
0x1425   :  { %v4762_v21 = vpop.f32.mrb[20].mxu1  ;;  %v1993_v46 = vadd.f32 1.0, %v4116_v45 }
0x1426   :  { %v3684_v42 = vpop.f32.mrb[21].mxu1 }
0x1427   :  { %4119 = vrcp.f32 %v1993_v46 }
0x1428   :  { %v4118_v47 = vpop.eup %4117 }
0x1429   :  { %v1887_v48 = vadd.f32 1.0, %v4118_v47 }
0x142b   :  { %4121 = vrcp.f32 %v1887_v48 }
0x142d   :  { %v4764_v20 = vpop.f32.mrb[22].mxu1 }
0x142e   :  { %v3706_v24 = vpop.f32.mrb[23].mxu1 }
0x1431   :  { %v4120_v50 = vpop.eup %4119 }
0x1432   :  { %v2008_v12 = vsub.f32 1.0, %v4120_v50  ;;  %v2015_v33 = vmul.f32 %v4120_v50, %v1914_v3 }
0x1435   :  { %v4766_v25 = vpop.f32.mrb[24].mxu1  ;;  %v4122_v55 = vpop.eup %4121 }
0x1436   :  { %v3728_v52 = vpop.f32.mrb[25].mxu1  ;;  %v1903_v9 = vsub.f32 1.0, %v4122_v55  ;;  %v1911_v17 = vmul.f32 %v4122_v55, %v1909_v23 }
0x143d   :  { %v4768_v28 = vpop.f32.mrb[26].mxu1 }
0x143e   :  { %v3750_v29 = vpop.f32.mrb[27].mxu1 }
0x1445   :  { %v4770_v58 = vpop.f32.mrb[28].mxu1 }
0x1446   :  { %v3772_v30 = vpop.f32.mrb[29].mxu1 }
0x144d   :  { %v4772_v31 = vpop.f32.mrb[30].mxu1 }
0x144e   :  { %v3794_v35 = vpop.f32.mrb[31].mxu1 }
0x148a   :  { %v1999_v53 = vpop.permute.xlu0 %1998 }
0x148b   :  { %v2001_v54 = vmul.f32 %v4120_v50, %v1999_v53 }
0x148d   :  { %2003 = vrot.lane.b32.xlu0 %v2001_v54, %s4147_s18 }
0x148e   :  { %v1894_v56 = vpop.permute.xlu1 %1893 }
0x148f   :  { %v1896_v57 = vmul.f32 %v4122_v55, %v1894_v56 }
0x1491   :  { %1898 = vrot.lane.b32.xlu1 %v1896_v57, %s4147_s18 }
0x14ff   :  { %v2004_v59 = vpop.permute.xlu0 %2003 }
0x1500   :  { %v2006_v60 = vadd.f32 %v2004_v59, %v4397_v51  ;;  %v2024_v51 = vld [vmem:[%s4904_s8 + $0x38] sm:$0xff] }
0x1501   :  { %v3933_v2 = vpack.c.bf16 %v2024_v51, %v2023_v7 }
0x1502   :  { %4123 = vtanh.f32 %v2006_v60 }
0x1503   :  { %v1899_v63 = vpop.permute.xlu1 %1898  ;;  %3934 = vmatpush3.bf16.msra.mxu0 %v3933_v2 }
0x1504   :  { %v1901_v1 = vadd.f32 %v1899_v63, %v4395_v49  ;;  %3941 = vmatprep.subr.bf16.mxu0 %v4144_v16 }
0x1506   :  { %4125 = vtanh.f32 %v1901_v1 }
0x150c   :  { %v4124_v49 = vpop.eup %4123 }
0x150d   :  { %2010 = vrot.lane.b32.xlu0 %v4124_v49, %s4148_s19 }
0x1510   :  { %v4126_v34 = vpop.eup %4125 }
0x1511   :  { %1905 = vrot.lane.b32.xlu1 %v4126_v34, %s4148_s19 }
0x157f   :  { %v2011_v15 = vpop.permute.xlu0 %2010 }
0x1580   :  { %v2013_v27 = vmul.f32 %v2011_v15, %v2008_v12 }
0x1582   :  { %v2016_v14 = vadd.f32 %v2015_v33, %v2013_v27 }
0x1583   :  { %v1906_v62 = vpop.permute.xlu1 %1905 }
0x1584   :  { %v1908_v36 = vmul.f32 %v1906_v62, %v1903_v9  ;;  %2027 = vrot.lane.b32.xlu0 %v2016_v14, %s4148_s19 }
0x1586   :  { %v1912_v18 = vadd.f32 %v1911_v17, %v1908_v36 }
0x1588   :  { %v3103_v41 = vrot.slane %v1912_v18, 6 }
0x158a   :  { %3104 = vrot.lane.b32.xlu1 %v3103_v41, %s4148_s19 }
0x15f6   :  { %v2028_v42 = vpop.permute.xlu0 %2027 }
0x15f7   :  { %3650 = vmatmul.mubr.msk.f32.vlgmr.msra.gmra.mrb[18].mxu0 %vm124_vm1, %v2028_v42 }
0x15f8   :  { %3943 = vmatpush3.bf16.msra.mxu0 %v4789_v10  ;;  %3671 = vmatprep.mubr.msk.f32.mxu0 %vm4145_vm2, %v4146_v43 }
0x15f9   :  { %3944 = vmatprep.subr.bf16.mxu0 %v4144_v16 }
0x15fc   :  { %3946 = vmatpush3.bf16.msra.mxu0 %v3933_v2  ;;  %v3105_v61 = vpop.permute.xlu1 %3104 }
0x15fd   :  { %3815 = vmatmul.mubr.msk.f32.vlgmr.msra.gmra.mrb[32].mxu1 %vm124_vm1, %v3105_v61  ;;  %3953 = vmatprep.subr.bf16.mxu0 %v4144_v16 }
0x15ff   :  { %3672 = vmatmul.mubr.msk.f32.vlgmr.msra.gmra.mrb[20].mxu0 %vm124_vm1, %v4701_v0 }
0x1600   :  { %3955 = vmatpush3.bf16.msra.mxu0 %v4789_v10  ;;  %3693 = vmatprep.mubr.msk.f32.mxu0 %vm4145_vm2, %v4146_v43 }
0x1601   :  { %3956 = vmatprep.subr.bf16.mxu0 %v4144_v16 }
0x1604   :  { %3958 = vmatpush3.bf16.msra.mxu0 %v3933_v2 }
0x1605   :  { %3965 = vmatprep.subr.bf16.mxu0 %v4144_v16 }
0x1607   :  { %3694 = vmatmul.mubr.msk.f32.vlgmr.msra.gmra.mrb[22].mxu0 %vm124_vm1, %v4645_v11 }
0x1608   :  { %3967 = vmatpush3.bf16.msra.mxu0 %v4789_v10  ;;  %3715 = vmatprep.mubr.msk.f32.mxu0 %vm4145_vm2, %v4146_v43 }
0x1609   :  { %3968 = vmatprep.subr.bf16.mxu0 %v4144_v16 }
0x160c   :  { %3970 = vmatpush3.bf16.msra.mxu0 %v3933_v2 }
0x160d   :  { %3977 = vmatprep.subr.bf16.mxu0 %v4144_v16 }
0x160f   :  { %3716 = vmatmul.mubr.msk.f32.vlgmr.msra.gmra.mrb[24].mxu0 %vm124_vm1, %v4603_v8 }
0x1610   :  { %3979 = vmatpush3.bf16.msra.mxu0 %v4789_v10  ;;  %3737 = vmatprep.mubr.msk.f32.mxu0 %vm4145_vm2, %v4146_v43 }
0x1611   :  { %3980 = vmatprep.subr.bf16.mxu0 %v4144_v16 }
0x1614   :  { %3982 = vmatpush3.bf16.msra.mxu0 %v3933_v2 }
0x1615   :  { %3989 = vmatprep.subr.bf16.mxu0 %v4144_v16 }
0x1617   :  { %3738 = vmatmul.mubr.msk.f32.vlgmr.msra.gmra.mrb[26].mxu0 %vm124_vm1, %v4560_v13 }
0x1618   :  { %3991 = vmatpush3.bf16.msra.mxu0 %v4789_v10  ;;  %3759 = vmatprep.mubr.msk.f32.mxu0 %vm4145_vm2, %v4146_v43 }
0x1619   :  { %3992 = vmatprep.subr.bf16.mxu0 %v4144_v16 }
0x161c   :  { %3994 = vmatpush3.bf16.msra.mxu0 %v3933_v2 }
0x161d   :  { %4001 = vmatprep.subr.bf16.mxu0 %v4144_v16 }
0x161f   :  { %3760 = vmatmul.mubr.msk.f32.vlgmr.msra.gmra.mrb[28].mxu0 %vm124_vm1, %v4517_v22  ;;  %v3256_v22 = vld [vmem:[%s4905_s9] ss:$0 sm:$0xff] }
0x1620   :  { %4003 = vmatpush3.bf16.msra.mxu0 %v4789_v10  ;;  %3781 = vmatprep.mubr.msk.f32.mxu0 %vm4145_vm2, %v4146_v43 }
0x1621   :  { %4004 = vmatprep.subr.bf16.mxu0 %v4144_v16 }
0x1624   :  { %4006 = vmatpush3.bf16.msra.mxu0 %v3933_v2 }
0x1625   :  { %4013 = vmatprep.subr.bf16.mxu0 %v4144_v16 }
0x1627   :  { %3782 = vmatmul.mubr.msk.f32.vlgmr.msra.gmra.mrb[30].mxu0 %vm124_vm1, %v4475_v26 }
0x1628   :  { %4015 = vmatpush3.bf16.msra.mxu0 %v4789_v10  ;;  %3803 = vmatprep.mubr.msk.f32.mxu0 %vm4145_vm2, %v4146_v43 }
0x1629   :  { %4016 = vmatprep.subr.bf16.mxu0 %v4144_v16 }
0x162c   :  { %4018 = vmatpush3.bf16.msra.mxu0 %v3933_v2 }
0x162f   :  { %3804 = vmatmul.mubr.msk.f32.vlgmr.msra.gmra.mrb[32].mxu0 %vm124_vm1, %v4433_v32 }
0x16ca   :  { %v2097_v13 = vpop.f32.mrb[18].mxu0 }
0x16cb   :  { %v2168_v8 = vadd.f32 %v4760_v19, %v2097_v13  ;;  %v3651_v11 = vpop.f32.mrb[19].mxu0 }
0x16cd   :  { %v2177_v26 = vadd.f32 %v3256_v22, %v2168_v8 }
0x16cf   :  { %2179 = vst.msk [vmem:[%s4906_s10] sm:$0x3] %vm2178_vm3, %v2177_v26 }
0x16d0   :  { %v3174_v16 = vpop.f32.mrb[32].mxu1 }
0x16d1   :  { %v3816_v43 = vpop.f32.mrb[33].mxu1 }
0x16d2   :  { %v2246_v3 = vpop.f32.mrb[20].mxu0 }
0x16d3   :  { %v2317_v32 = vadd.f32 %v4762_v21, %v2246_v3  ;;  %v3673_v5 = vpop.f32.mrb[21].mxu0 }
0x16d5   :  { %v2320_v0 = vadd.f32 %v3256_v22, %v2317_v32 }
0x16d7   :  { %2321 = vst.msk [vmem:[%s4906_s10 + $0x2] sm:$0x3] %vm2178_vm3, %v2320_v0 }
0x16da   :  { %v2388_v19 = vpop.f32.mrb[22].mxu0 }
0x16db   :  { %v2459_v24 = vadd.f32 %v4764_v20, %v2388_v19  ;;  %v3695_v52 = vpop.f32.mrb[23].mxu0 }
0x16dd   :  { %v2462_v29 = vadd.f32 %v3256_v22, %v2459_v24 }
0x16df   :  { %2463 = vst.msk [vmem:[%s4906_s10 + $0x4] sm:$0x3] %vm2178_vm3, %v2462_v29 }
0x16e2   :  { %v2530_v30 = vpop.f32.mrb[24].mxu0 }
0x16e3   :  { %v2601_v21 = vadd.f32 %v4766_v25, %v2530_v30  ;;  %v3717_v35 = vpop.f32.mrb[25].mxu0 }
0x16e5   :  { %v2604_v37 = vadd.f32 %v3256_v22, %v2601_v21 }
0x16e7   :  { %2605 = vst.msk [vmem:[%s4906_s10 + $0x6] sm:$0x3] %vm2178_vm3, %v2604_v37 }
0x16ea   :  { %v2672_v38 = vpop.f32.mrb[26].mxu0 }
0x16eb   :  { %v2743_v20 = vadd.f32 %v4768_v28, %v2672_v38  ;;  %v3739_v39 = vpop.f32.mrb[27].mxu0 }
0x16ed   :  { %v2746_v40 = vadd.f32 %v3256_v22, %v2743_v20 }
0x16ef   :  { %2747 = vst.msk [vmem:[%s4906_s10 + $0x8] sm:$0x3] %vm2178_vm3, %v2746_v40 }
0x16f2   :  { %v2814_v44 = vpop.f32.mrb[28].mxu0 }
0x16f3   :  { %v2885_v25 = vadd.f32 %v4770_v58, %v2814_v44  ;;  %v3761_v45 = vpop.f32.mrb[29].mxu0 }
0x16f5   :  { %v2888_v46 = vadd.f32 %v3256_v22, %v2885_v25 }
0x16f7   :  { %2889 = vst.msk [vmem:[%s4906_s10 + $0xa] sm:$0x3] %vm2178_vm3, %v2888_v46 }
0x16fa   :  { %v2956_v47 = vpop.f32.mrb[30].mxu0 }
0x16fb   :  { %v3027_v28 = vadd.f32 %v4772_v31, %v2956_v47  ;;  %v3783_v48 = vpop.f32.mrb[31].mxu0 }
0x16fd   :  { %v3030_v50 = vadd.f32 %v3256_v22, %v3027_v28 }
0x16ff   :  { %3031 = vst.msk [vmem:[%s4906_s10 + $0xc] sm:$0x3] %vm2178_vm3, %v3030_v50 }
0x1702   :  { %v3098_v53 = vpop.f32.mrb[32].mxu0 }
0x1703   :  { %v3175_v54 = vadd.f32 %v3174_v16, %v3098_v53  ;;  %v3805_v58 = vpop.f32.mrb[33].mxu0 }
0x1705   :  { %v3178_v55 = vadd.f32 %v3256_v22, %v3175_v54 }
0x1707   :  { %3179 = vst.msk [vmem:[%s4906_s10 + $0xe] sm:$0x3] %vm2178_vm3, %v3178_v55 }
0x1708   :  { %3184 = vsyncpa [#allocation4], 1 }

</bundles_post_ra>
